<compile_context>
chip_gen: v5e
topology: v5e:2x2
jax: 0.10.0
libtpu: 0.0.40
codegen_flags: <defaults>
</compile_context>

<pallas_src>
import math
from functools import partial

import jax
import jax.numpy as jnp
from jax.experimental import pallas as pl
from jax.experimental.pallas import tpu as pltpu

LOG2 = math.log(2.0)


def _round_up(x, m):
    return ((x + m - 1) // m) * m


def _ssp(x):
    # ShiftedSoftplus: softplus(x) - log(2), numerically stable formulation.
    # (log1p would be marginally more precise but log(1+exp(-|x|)) lowers
    #  cleanly on all TPU generations and the error is << bf16 matmul noise.)
    return jnp.maximum(x, 0.0) + jnp.log(1.0 + jnp.exp(-jnp.abs(x))) - LOG2


def _fused_kernel(h0_ref, c_ref, eattr_ref, src_ref, dst_ref,
                  wm1_ref, bm1_ref, wm2_ref, bm2_ref,
                  wl1_ref, wl2_ref, bl2_ref, wlin_ref, blin_ref,
                  out_ref, h_sc, xf_sc, agg_sc):
    l = pl.program_id(0)           # interaction-block index
    ke = pl.program_id(1)          # edge-tile index
    ke_last = pl.num_programs(1) - 1

    # One-time init of the resident node features.
    @pl.when(jnp.logical_and(l == 0, ke == 0))
    def _():
        h_sc[...] = h0_ref[...]

    # Per-block init (first edge tile): CFConv.lin1 (no bias) + zero the
    # scatter-add accumulator.
    @pl.when(ke == 0)
    def _():
        xf_sc[...] = jnp.dot(h_sc[...].astype(jnp.bfloat16), wl1_ref[...],
                             preferred_element_type=jnp.float32)
        agg_sc[...] = jnp.zeros_like(agg_sc)

    # ---- edge tile: filter-generating MLP, W = mlp(edge_attr) * C ----
    t = jnp.dot(eattr_ref[...], wm1_ref[...],
                preferred_element_type=jnp.float32) + bm1_ref[...]
    t = _ssp(t)
    t = jnp.dot(t.astype(jnp.bfloat16), wm2_ref[...],
                preferred_element_type=jnp.float32) + bm2_ref[...]
    W = t * c_ref[...]                                       # [TE, F] f32

    # ---- gather / message / scatter-add as one-hot MXU matmuls ----
    te = eattr_ref.shape[0]
    pn = h_sc.shape[0]
    src = src_ref[...]                                       # [TE, 1] i32
    dst = dst_ref[...]                                       # [1, TE] i32
    src_oh = (jax.lax.broadcasted_iota(jnp.int32, (te, pn), 1) == src
              ).astype(jnp.bfloat16)                         # [TE, N] gather
    dst_oh = (jax.lax.broadcasted_iota(jnp.int32, (pn, te), 0) == dst
              ).astype(jnp.bfloat16)                         # [N, TE] scatter (pre-transposed)

    x_j = jnp.dot(src_oh, xf_sc[...].astype(jnp.bfloat16),
                  preferred_element_type=jnp.float32)        # [TE, F]
    msg = (x_j * W).astype(jnp.bfloat16)                     # [TE, F]
    agg_sc[...] += jnp.dot(dst_oh, msg,
                           preferred_element_type=jnp.float32)   # [N, F]

    # ---- block finalize (last edge tile): lin2 -> ssp -> lin -> residual ----
    @pl.when(ke == ke_last)
    def _():
        y = jnp.dot(agg_sc[...].astype(jnp.bfloat16), wl2_ref[...],
                    preferred_element_type=jnp.float32) + bl2_ref[...]
        y = _ssp(y)
        y = jnp.dot(y.astype(jnp.bfloat16), wlin_ref[...],
                    preferred_element_type=jnp.float32) + blin_ref[...]
        h_new = h_sc[...] + y
        h_sc[...] = h_new
        out_ref[...] = h_new


def schnet_encoder(z, edge_index, edge_length, edge_attr, blocks, *,
                   cutoff, smooth, edge_tile=1024):
    """embed_node=False path of SchNetEncoder.forward (edge_attr supplied)."""
    N, H = z.shape
    E = edge_index.shape[1]
    G = edge_attr.shape[1]
    F_ = blocks[0][0].shape[1]          # num_filters
    L = len(blocks)

    pN = _round_up(N, 8)
    pH = _round_up(H, 128)              # lane-dense channels
    pF = _round_up(F_, 128)
    pG = _round_up(G, 128)
    TE = min(edge_tile, _round_up(E, 128))   # edge tile (multiple of 128)
    pE = _round_up(E, TE)
    KE = pE // TE

    f32, bf16 = jnp.float32, jnp.bfloat16

    def pad2(x, r, c, dtype):
        x = jnp.asarray(x, jnp.float32)
        return jnp.pad(x, ((0, r - x.shape[0]), (0, c - x.shape[1]))).astype(dtype)

    # node features
    h0 = pad2(z, pN, pH, f32)

    # per-edge data; padded edges get src/dst = -1 and C = 0 -> zero contribution
    elen = edge_length.reshape(-1).astype(f32)
    if smooth:
        C = 0.5 * (jnp.cos(elen * (math.pi / cutoff)) + 1.0)
        C = C * (elen <= cutoff).astype(f32) * (elen >= 0.0).astype(f32)
    else:
        C = (elen <= cutoff).astype(f32)
    C = jnp.pad(C, (0, pE - E)).reshape(pE, 1)
    eattr = pad2(edge_attr, pE, pG, bf16)
    src = jnp.pad(edge_index[0].astype(jnp.int32), (0, pE - E),
                  constant_values=-1).reshape(pE, 1)
    dst = jnp.pad(edge_index[1].astype(jnp.int32), (0, pE - E),
                  constant_values=-1).reshape(1, pE)

    # stack per-block weights along a leading L axis (bf16 weights, f32 biases)
    def stack(idx, r, c, dtype):
        return jnp.stack([pad2(b[idx], r, c, dtype) for b in blocks])

    WM1 = stack(0, pG, pF, bf16)
    BM1 = stack(1, 1, pF, f32)
    WM2 = stack(2, pF, pF, bf16)
    BM2 = stack(3, 1, pF, f32)
    WL1 = stack(4, pH, pF, bf16)
    WL2 = stack(5, pF, pH, bf16)
    BL2 = stack(6, 1, pH, f32)
    WLIN = stack(7, pH, pH, bf16)
    BLIN = stack(8, 1, pH, f32)

    edge_spec = lambda bs: pl.BlockSpec(bs, lambda l, ke: (ke, 0))
    const_spec = lambda bs: pl.BlockSpec(bs, lambda l, ke: (0, 0))
    wspec = lambda bs: pl.BlockSpec(bs, lambda l, ke: (l, 0, 0))

    in_specs = [
        const_spec((pN, pH)),                              # h0
        edge_spec((TE, 1)),                                # C
        edge_spec((TE, pG)),                               # edge_attr
        edge_spec((TE, 1)),                                # src (column)
        pl.BlockSpec((1, TE), lambda l, ke: (0, ke)),      # dst (row)
        wspec((None, pG, pF)), wspec((None, 1, pF)),       # mlp lin1
        wspec((None, pF, pF)), wspec((None, 1, pF)),       # mlp lin2
        wspec((None, pH, pF)),                             # CFConv.lin1
        wspec((None, pF, pH)), wspec((None, 1, pH)),       # CFConv.lin2
        wspec((None, pH, pH)), wspec((None, 1, pH)),       # InteractionBlock.lin
    ]

    # advisory cost estimate for XLA scheduling
    flops = 2 * L * (KE * TE * (pG * pF + pF * pF + 2 * pN * pF)
                     + pN * (pH * pF + pF * pH + pH * pH))
    transcendentals = L * (KE * TE * pF + pN * pH)
    bytes_accessed = int(
        4 * (h0.size + C.size + src.size + dst.size + pN * pH)
        + 2 * (eattr.size + WM1.size + WM2.size + WL1.size + WL2.size + WLIN.size)
        + 4 * (BM1.size + BM2.size + BL2.size + BLIN.size))

    out = pl.pallas_call(
        _fused_kernel,
        out_shape=jax.ShapeDtypeStruct((pN, pH), f32),
        grid=(L, KE),
        in_specs=in_specs,
        out_specs=const_spec((pN, pH)),
        scratch_shapes=[
            pltpu.VMEM((pN, pH), f32),    # resident node features h
            pltpu.VMEM((pN, pF), f32),    # xf = h @ lin1.W (per block)
            pltpu.VMEM((pN, pF), f32),    # scatter-add accumulator
        ],
        compiler_params=pltpu.CompilerParams(
            dimension_semantics=("arbitrary", "arbitrary")),
        cost_estimate=pl.CostEstimate(flops=flops,
                                      transcendentals=transcendentals,
                                      bytes_accessed=bytes_accessed),
    )(h0, C, eattr, src, dst, WM1, BM1, WM2, BM2, WL1, WL2, BL2, WLIN, BLIN)

    return out[:N, :H]


# ----------------------------- pure-JAX reference ---------------------------

def _ref_forward(z, edge_index, edge_length, edge_attr, blocks, *, cutoff, smooth):
    h = z.astype(jnp.float32)
    src, dst = edge_index[0], edge_index[1]
    elen = edge_length.reshape(-1, 1).astype(jnp.float32)
    if smooth:
        C = 0.5 * (jnp.cos(elen * (math.pi / cutoff)) + 1.0)
        C = C * (elen <= cutoff).astype(jnp.float32) * (elen >= 0.0).astype(jnp.float32)
    else:
        C = (elen <= cutoff).astype(jnp.float32)
    N = h.shape[0]
    for (wm1, bm1, wm2, bm2, wl1, wl2, bl2, wlin, blin) in blocks:
        W = (_ssp(edge_attr @ wm1 + bm1) @ wm2 + bm2) * C
        xf = h @ wl1
        msg = xf[src] * W
        agg = jnp.zeros((N, xf.shape[1]), jnp.float32).at[dst].add(msg)
        y = _ssp(agg @ wl2 + bl2) @ wlin + blin
        h = h + y
    return h


# --------------------------------- params -----------------------------------

def _xavier(key, shape):
    fan_in, fan_out = shape
    a = math.sqrt(6.0 / (fan_in + fan_out))
    return jax.random.uniform(key, shape, jnp.float32, -a, a)


def init_params(key, hidden, num_filters, edge_channels, num_interactions):
    """Deterministic synthetic parameters matching the module's shapes."""
    blocks = []
    for _ in range(num_interactions):
        keys = jax.random.split(key, 8)
        key = keys[-1]
        wm1 = _xavier(keys[0], (edge_channels, num_filters))   # mlp Linear 1
        bm1 = 0.01 * jax.random.normal(keys[5], (1, num_filters), jnp.float32)
        wm2 = _xavier(keys[1], (num_filters, num_filters))     # mlp Linear 2
        bm2 = 0.01 * jax.random.normal(keys[6], (1, num_filters), jnp.float32)
        wl1 = _xavier(keys[2], (hidden, num_filters))          # CFConv.lin1 (no bias)
        wl2 = _xavier(keys[3], (num_filters, hidden))          # CFConv.lin2
        bl2 = jnp.zeros((1, hidden), jnp.float32)               # zero-filled in reset_parameters
        wlin = _xavier(keys[4], (hidden, hidden))               # InteractionBlock.lin
        blin = jnp.zeros((1, hidden), jnp.float32)
        blocks.append((wm1, bm1, wm2, bm2, wl1, wl2, bl2, wlin, blin))
    return blocks


if __name__ == "__main__":
    # small shapes consistent with the module's forward
    N, E = 8, 16                 # nodes, edges
    hidden = 32                  # hidden_channels
    num_filters = 32
    edge_channels = 32           # num_gaussians / edge feature dim
    num_interactions = 2
    cutoff = 10.0
    smooth = False

    key = jax.random.PRNGKey(0)
    k1, k2, k3, k4, k5 = jax.random.split(key, 5)
    z = jax.random.normal(k1, (N, hidden), jnp.float32)                  # node features (embed_node=False)
    edge_index = jax.random.randint(k2, (2, E), 0, N, jnp.int32)         # [2, E]
    edge_length = jax.random.uniform(k3, (E, 1), jnp.float32, 0.0, 12.0) # some edges beyond cutoff
    edge_attr = jax.random.normal(k4, (E, edge_channels), jnp.float32)
    blocks = init_params(k5, hidden, num_filters, edge_channels, num_interactions)

    # TODO(synk): the optional node Embedding (embed_node=True) and
    # edge_emb/edge_cat/edge_d_emb paths are config-disabled here (edge_attr
    # supplied, embed_node=False) and not kernelized.
    out = schnet_encoder(z, edge_index, edge_length, edge_attr, blocks,
                         cutoff=cutoff, smooth=smooth)
    out = jax.block_until_ready(out)
    assert out.shape == (N, hidden) and out.dtype == jnp.float32

    ref = _ref_forward(z, edge_index, edge_length, edge_attr, blocks,
                       cutoff=cutoff, smooth=smooth)
    max_err = float(jnp.max(jnp.abs(out - ref)))
    assert max_err < 0.3, f"mismatch vs f32 reference: max abs err = {max_err}"
    print("KERNEL_OK")
</pallas_src>

<mosaic_0001>
module attributes {stable_mosaic.version = 11 : i64} {
  func.func @_fused_kernel(%arg0: i32, %arg1: i32, %arg2: memref<8x128xf32, #tpu.memory_space<vmem>>, %arg3: memref<128x1xf32, #tpu.memory_space<vmem>>, %arg4: memref<128x128xbf16, #tpu.memory_space<vmem>>, %arg5: memref<128x1xi32, #tpu.memory_space<vmem>>, %arg6: memref<1x128xi32, #tpu.memory_space<vmem>>, %arg7: memref<1x128x128xbf16, #tpu.memory_space<vmem>>, %arg8: memref<1x1x128xf32, #tpu.memory_space<vmem>>, %arg9: memref<1x128x128xbf16, #tpu.memory_space<vmem>>, %arg10: memref<1x1x128xf32, #tpu.memory_space<vmem>>, %arg11: memref<1x128x128xbf16, #tpu.memory_space<vmem>>, %arg12: memref<1x128x128xbf16, #tpu.memory_space<vmem>>, %arg13: memref<1x1x128xf32, #tpu.memory_space<vmem>>, %arg14: memref<1x128x128xbf16, #tpu.memory_space<vmem>>, %arg15: memref<1x1x128xf32, #tpu.memory_space<vmem>>, %arg16: memref<8x128xf32, #tpu.memory_space<vmem>>, %arg17: memref<8x128xf32, #tpu.memory_space<vmem>>, %arg18: memref<8x128xf32, #tpu.memory_space<vmem>>, %arg19: memref<8x128xf32, #tpu.memory_space<vmem>>) attributes {dimension_semantics = [#tpu.dimension_semantics<arbitrary>, #tpu.dimension_semantics<arbitrary>], iteration_bounds = array<i64: 2, 1>, scalar_prefetch = 0 : i64, scratch_operands = 3 : i64, tpu.core_type = #tpu.core_type<tc>, window_params = [{pipeline_mode = #tpu.pipeline_mode<synchronous>, transform_indices = @transform_0, window_bounds = array<i64: 8, 128>}, {transform_indices = @transform_1, window_bounds = array<i64: 128, 1>}, {transform_indices = @transform_2, window_bounds = array<i64: 128, 128>}, {transform_indices = @transform_3, window_bounds = array<i64: 128, 1>}, {transform_indices = @transform_4, window_bounds = array<i64: 1, 128>}, {transform_indices = @transform_5, window_bounds = array<i64: 1, 128, 128>}, {transform_indices = @transform_6, window_bounds = array<i64: 1, 1, 128>}, {transform_indices = @transform_7, window_bounds = array<i64: 1, 128, 128>}, {transform_indices = @transform_8, window_bounds = array<i64: 1, 1, 128>}, {transform_indices = @transform_9, window_bounds = array<i64: 1, 128, 128>}, {transform_indices = @transform_10, window_bounds = array<i64: 1, 128, 128>}, {transform_indices = @transform_11, window_bounds = array<i64: 1, 1, 128>}, {transform_indices = @transform_12, window_bounds = array<i64: 1, 128, 128>}, {transform_indices = @transform_13, window_bounds = array<i64: 1, 1, 128>}, {pipeline_mode = #tpu.pipeline_mode<synchronous>, transform_indices = @transform_14, window_bounds = array<i64: 8, 128>}]} {
    %c0_i32 = arith.constant 0 : i32
    %0 = arith.cmpi eq, %arg0, %c0_i32 : i32
    %c0_i32_0 = arith.constant 0 : i32
    %1 = arith.cmpi eq, %arg1, %c0_i32_0 : i32
    %2 = arith.andi %0, %1 : i1
    %3 = arith.extui %2 : i1 to i32
    %c0_i32_1 = arith.constant 0 : i32
    %4 = arith.cmpi ne, %3, %c0_i32_1 : i32
    scf.if %4 {
      %c0_38 = arith.constant 0 : index
      %c0_39 = arith.constant 0 : index
      %65 = vector.load %arg2[%c0_38, %c0_39] : memref<8x128xf32, #tpu.memory_space<vmem>>, vector<8x128xf32>
      %c0_40 = arith.constant 0 : index
      %c0_41 = arith.constant 0 : index
      %66 = vector.load %arg17[%c0_40, %c0_41] : memref<8x128xf32, #tpu.memory_space<vmem>>, vector<8x128xf32>
      tpu.vector_store %arg17[%c0_40, %c0_41], %65 {strides = array<i32>} : memref<8x128xf32, #tpu.memory_space<vmem>>, vector<8x128xf32>,
    } else {
    }
    %c0_i32_2 = arith.constant 0 : i32
    %5 = arith.cmpi eq, %arg1, %c0_i32_2 : i32
    %6 = arith.extui %5 : i1 to i32
    %c0_i32_3 = arith.constant 0 : i32
    %7 = arith.cmpi ne, %6, %c0_i32_3 : i32
    scf.if %7 {
      %c0_38 = arith.constant 0 : index
      %c0_39 = arith.constant 0 : index
      %65 = vector.load %arg17[%c0_38, %c0_39] : memref<8x128xf32, #tpu.memory_space<vmem>>, vector<8x128xf32>
      %66 = arith.truncf %65 : vector<8x128xf32> to vector<8x128xbf16>
      %c0_40 = arith.constant 0 : index
      %c0_41 = arith.constant 0 : index
      %c0_42 = arith.constant 0 : index
      %67 = vector.load %arg11[%c0_40, %c0_41, %c0_42] : memref<1x128x128xbf16, #tpu.memory_space<vmem>>, vector<1x128x128xbf16>
      %68 = vector.shape_cast %67 : vector<1x128x128xbf16> to vector<128x128xbf16>
      %cst_43 = arith.constant dense<0.000000e+00> : vector<8x128xf32>
      %69 = tpu.matmul %66, %68, %cst_43 {dimension_numbers = #tpu.dot_dimension_numbers<[1], [0], [0], [1], [0, 0, 1, 1], [], []>} : vector<8x128xbf16>, vector<128x128xbf16>, vector<8x128xf32> -> vector<8x128xf32>
      %c0_44 = arith.constant 0 : index
      %c0_45 = arith.constant 0 : index
      %70 = vector.load %arg18[%c0_44, %c0_45] : memref<8x128xf32, #tpu.memory_space<vmem>>, vector<8x128xf32>
      tpu.vector_store %arg18[%c0_44, %c0_45], %69 {strides = array<i32>} : memref<8x128xf32, #tpu.memory_space<vmem>>, vector<8x128xf32>,
      %cst_46 = arith.constant 0.000000e+00 : f32
      %71 = vector.broadcast %cst_46 : f32 to vector<8x128xf32>
      %c0_47 = arith.constant 0 : index
      %c0_48 = arith.constant 0 : index
      %72 = vector.load %arg19[%c0_47, %c0_48] : memref<8x128xf32, #tpu.memory_space<vmem>>, vector<8x128xf32>
      tpu.vector_store %arg19[%c0_47, %c0_48], %71 {strides = array<i32>} : memref<8x128xf32, #tpu.memory_space<vmem>>, vector<8x128xf32>,
    } else {
    }
    %c0 = arith.constant 0 : index
    %c0_4 = arith.constant 0 : index
    %8 = vector.load %arg4[%c0, %c0_4] : memref<128x128xbf16, #tpu.memory_space<vmem>>, vector<128x128xbf16>
    %c0_5 = arith.constant 0 : index
    %c0_6 = arith.constant 0 : index
    %c0_7 = arith.constant 0 : index
    %9 = vector.load %arg7[%c0_5, %c0_6, %c0_7] : memref<1x128x128xbf16, #tpu.memory_space<vmem>>, vector<1x128x128xbf16>
    %10 = vector.shape_cast %9 : vector<1x128x128xbf16> to vector<128x128xbf16>
    %cst = arith.constant dense<0.000000e+00> : vector<128x128xf32>
    %11 = tpu.matmul %8, %10, %cst {dimension_numbers = #tpu.dot_dimension_numbers<[1], [0], [0], [1], [0, 0, 1, 1], [], []>} : vector<128x128xbf16>, vector<128x128xbf16>, vector<128x128xf32> -> vector<128x128xf32>
    %c0_8 = arith.constant 0 : index
    %c0_9 = arith.constant 0 : index
    %c0_10 = arith.constant 0 : index
    %12 = vector.load %arg8[%c0_8, %c0_9, %c0_10] : memref<1x1x128xf32, #tpu.memory_space<vmem>>, vector<1x1x128xf32>
    %13 = vector.shape_cast %12 : vector<1x1x128xf32> to vector<1x128xf32>
    %14 = vector.broadcast %13 : vector<1x128xf32> to vector<128x128xf32>
    %15 = arith.addf %11, %14 : vector<128x128xf32>
    %cst_11 = arith.constant 0.000000e+00 : f32
    %16 = vector.broadcast %cst_11 : f32 to vector<128x128xf32>
    %17 = arith.maximumf %15, %16 : vector<128x128xf32>
    %18 = math.absf %15 : vector<128x128xf32>
    %cst_12 = arith.constant 0.000000e+00 : f32
    %19 = vector.broadcast %cst_12 : f32 to vector<128x128xf32>
    %20 = arith.subf %19, %18 : vector<128x128xf32>
    %21 = math.exp %20 : vector<128x128xf32>
    %cst_13 = arith.constant 1.000000e+00 : f32
    %22 = vector.broadcast %cst_13 : f32 to vector<128x128xf32>
    %23 = arith.addf %22, %21 : vector<128x128xf32>
    %24 = math.log %23 : vector<128x128xf32>
    %25 = arith.addf %17, %24 : vector<128x128xf32>
    %cst_14 = arith.constant 0.693147182 : f32
    %26 = vector.broadcast %cst_14 : f32 to vector<128x128xf32>
    %27 = arith.subf %25, %26 : vector<128x128xf32>
    %28 = arith.truncf %27 : vector<128x128xf32> to vector<128x128xbf16>
    %c0_15 = arith.constant 0 : index
    %c0_16 = arith.constant 0 : index
    %c0_17 = arith.constant 0 : index
    %29 = vector.load %arg9[%c0_15, %c0_16, %c0_17] : memref<1x128x128xbf16, #tpu.memory_space<vmem>>, vector<1x128x128xbf16>
    %30 = vector.shape_cast %29 : vector<1x128x128xbf16> to vector<128x128xbf16>
    %cst_18 = arith.constant dense<0.000000e+00> : vector<128x128xf32>
    %31 = tpu.matmul %28, %30, %cst_18 {dimension_numbers = #tpu.dot_dimension_numbers<[1], [0], [0], [1], [0, 0, 1, 1], [], []>} : vector<128x128xbf16>, vector<128x128xbf16>, vector<128x128xf32> -> vector<128x128xf32>
    %c0_19 = arith.constant 0 : index
    %c0_20 = arith.constant 0 : index
    %c0_21 = arith.constant 0 : index
    %32 = vector.load %arg10[%c0_19, %c0_20, %c0_21] : memref<1x1x128xf32, #tpu.memory_space<vmem>>, vector<1x1x128xf32>
    %33 = vector.shape_cast %32 : vector<1x1x128xf32> to vector<1x128xf32>
    %34 = vector.broadcast %33 : vector<1x128xf32> to vector<128x128xf32>
    %35 = arith.addf %31, %34 : vector<128x128xf32>
    %c0_22 = arith.constant 0 : index
    %c0_23 = arith.constant 0 : index
    %36 = vector.load %arg3[%c0_22, %c0_23] : memref<128x1xf32, #tpu.memory_space<vmem>>, vector<128x1xf32>
    %37 = vector.broadcast %36 : vector<128x1xf32> to vector<128x128xf32>
    %38 = arith.mulf %35, %37 : vector<128x128xf32>
    %c0_24 = arith.constant 0 : index
    %c0_25 = arith.constant 0 : index
    %39 = vector.load %arg5[%c0_24, %c0_25] : memref<128x1xi32, #tpu.memory_space<vmem>>, vector<128x1xi32>
    %c0_26 = arith.constant 0 : index
    %c0_27 = arith.constant 0 : index
    %40 = vector.load %arg6[%c0_26, %c0_27] : memref<1x128xi32, #tpu.memory_space<vmem>>, vector<1x128xi32>
    %41 = tpu.iota {dimensions = array<i32: 1>} : vector<128x8xi32>
    %42 = vector.broadcast %39 : vector<128x1xi32> to vector<128x8xi32>
    %43 = arith.cmpi eq, %41, %42 : vector<128x8xi32>
    %44 = arith.extui %43 : vector<128x8xi1> to vector<128x8xi32>
    %45 = arith.sitofp %44 : vector<128x8xi32> to vector<128x8xf32>
    %46 = arith.truncf %45 : vector<128x8xf32> to vector<128x8xbf16>
    %47 = tpu.iota {dimensions = array<i32: 0>} : vector<8x128xi32>
    %48 = vector.broadcast %40 : vector<1x128xi32> to vector<8x128xi32>
    %49 = arith.cmpi eq, %47, %48 : vector<8x128xi32>
    %50 = arith.extui %49 : vector<8x128xi1> to vector<8x128xi32>
    %51 = arith.sitofp %50 : vector<8x128xi32> to vector<8x128xf32>
    %52 = arith.truncf %51 : vector<8x128xf32> to vector<8x128xbf16>
    %c0_28 = arith.constant 0 : index
    %c0_29 = arith.constant 0 : index
    %53 = vector.load %arg18[%c0_28, %c0_29] : memref<8x128xf32, #tpu.memory_space<vmem>>, vector<8x128xf32>
    %54 = arith.truncf %53 : vector<8x128xf32> to vector<8x128xbf16>
    %cst_30 = arith.constant dense<0.000000e+00> : vector<128x128xf32>
    %55 = tpu.matmul %46, %54, %cst_30 {dimension_numbers = #tpu.dot_dimension_numbers<[1], [0], [0], [1], [0, 0, 1, 1], [], []>} : vector<128x8xbf16>, vector<8x128xbf16>, vector<128x128xf32> -> vector<128x128xf32>
    %56 = arith.mulf %55, %38 : vector<128x128xf32>
    %57 = arith.truncf %56 : vector<128x128xf32> to vector<128x128xbf16>
    %c0_31 = arith.constant 0 : index
    %c0_32 = arith.constant 0 : index
    %58 = vector.load %arg19[%c0_31, %c0_32] : memref<8x128xf32, #tpu.memory_space<vmem>>, vector<8x128xf32>
    %cst_33 = arith.constant dense<0.000000e+00> : vector<8x128xf32>
    %59 = tpu.matmul %52, %57, %cst_33 {dimension_numbers = #tpu.dot_dimension_numbers<[1], [0], [0], [1], [0, 0, 1, 1], [], []>} : vector<8x128xbf16>, vector<128x128xbf16>, vector<8x128xf32> -> vector<8x128xf32>
    %60 = arith.addf %58, %59 : vector<8x128xf32>
    %c0_34 = arith.constant 0 : index
    %c0_35 = arith.constant 0 : index
    %61 = vector.load %arg19[%c0_34, %c0_35] : memref<8x128xf32, #tpu.memory_space<vmem>>, vector<8x128xf32>
    tpu.vector_store %arg19[%c0_34, %c0_35], %60 {strides = array<i32>} : memref<8x128xf32, #tpu.memory_space<vmem>>, vector<8x128xf32>,
    %c0_i32_36 = arith.constant 0 : i32
    %62 = arith.cmpi eq, %arg1, %c0_i32_36 : i32
    %63 = arith.extui %62 : i1 to i32
    %c0_i32_37 = arith.constant 0 : i32
    %64 = arith.cmpi ne, %63, %c0_i32_37 : i32
    scf.if %64 {
      %c0_38 = arith.constant 0 : index
      %c0_39 = arith.constant 0 : index
      %65 = vector.load %arg19[%c0_38, %c0_39] : memref<8x128xf32, #tpu.memory_space<vmem>>, vector<8x128xf32>
      %66 = arith.truncf %65 : vector<8x128xf32> to vector<8x128xbf16>
      %c0_40 = arith.constant 0 : index
      %c0_41 = arith.constant 0 : index
      %c0_42 = arith.constant 0 : index
      %67 = vector.load %arg12[%c0_40, %c0_41, %c0_42] : memref<1x128x128xbf16, #tpu.memory_space<vmem>>, vector<1x128x128xbf16>
      %68 = vector.shape_cast %67 : vector<1x128x128xbf16> to vector<128x128xbf16>
      %cst_43 = arith.constant dense<0.000000e+00> : vector<8x128xf32>
      %69 = tpu.matmul %66, %68, %cst_43 {dimension_numbers = #tpu.dot_dimension_numbers<[1], [0], [0], [1], [0, 0, 1, 1], [], []>} : vector<8x128xbf16>, vector<128x128xbf16>, vector<8x128xf32> -> vector<8x128xf32>
      %c0_44 = arith.constant 0 : index
      %c0_45 = arith.constant 0 : index
      %c0_46 = arith.constant 0 : index
      %70 = vector.load %arg13[%c0_44, %c0_45, %c0_46] : memref<1x1x128xf32, #tpu.memory_space<vmem>>, vector<1x1x128xf32>
      %71 = vector.shape_cast %70 : vector<1x1x128xf32> to vector<1x128xf32>
      %72 = vector.broadcast %71 : vector<1x128xf32> to vector<8x128xf32>
      %73 = arith.addf %69, %72 : vector<8x128xf32>
      %cst_47 = arith.constant 0.000000e+00 : f32
      %74 = vector.broadcast %cst_47 : f32 to vector<8x128xf32>
      %75 = arith.maximumf %73, %74 : vector<8x128xf32>
      %76 = math.absf %73 : vector<8x128xf32>
      %cst_48 = arith.constant 0.000000e+00 : f32
      %77 = vector.broadcast %cst_48 : f32 to vector<8x128xf32>
      %78 = arith.subf %77, %76 : vector<8x128xf32>
      %79 = math.exp %78 : vector<8x128xf32>
      %cst_49 = arith.constant 1.000000e+00 : f32
      %80 = vector.broadcast %cst_49 : f32 to vector<8x128xf32>
      %81 = arith.addf %80, %79 : vector<8x128xf32>
      %82 = math.log %81 : vector<8x128xf32>
      %83 = arith.addf %75, %82 : vector<8x128xf32>
      %cst_50 = arith.constant 0.693147182 : f32
      %84 = vector.broadcast %cst_50 : f32 to vector<8x128xf32>
      %85 = arith.subf %83, %84 : vector<8x128xf32>
      %86 = arith.truncf %85 : vector<8x128xf32> to vector<8x128xbf16>
      %c0_51 = arith.constant 0 : index
      %c0_52 = arith.constant 0 : index
      %c0_53 = arith.constant 0 : index
      %87 = vector.load %arg14[%c0_51, %c0_52, %c0_53] : memref<1x128x128xbf16, #tpu.memory_space<vmem>>, vector<1x128x128xbf16>
      %88 = vector.shape_cast %87 : vector<1x128x128xbf16> to vector<128x128xbf16>
      %cst_54 = arith.constant dense<0.000000e+00> : vector<8x128xf32>
      %89 = tpu.matmul %86, %88, %cst_54 {dimension_numbers = #tpu.dot_dimension_numbers<[1], [0], [0], [1], [0, 0, 1, 1], [], []>} : vector<8x128xbf16>, vector<128x128xbf16>, vector<8x128xf32> -> vector<8x128xf32>
      %c0_55 = arith.constant 0 : index
      %c0_56 = arith.constant 0 : index
      %c0_57 = arith.constant 0 : index
      %90 = vector.load %arg15[%c0_55, %c0_56, %c0_57] : memref<1x1x128xf32, #tpu.memory_space<vmem>>, vector<1x1x128xf32>
      %91 = vector.shape_cast %90 : vector<1x1x128xf32> to vector<1x128xf32>
      %92 = vector.broadcast %91 : vector<1x128xf32> to vector<8x128xf32>
      %93 = arith.addf %89, %92 : vector<8x128xf32>
      %c0_58 = arith.constant 0 : index
      %c0_59 = arith.constant 0 : index
      %94 = vector.load %arg17[%c0_58, %c0_59] : memref<8x128xf32, #tpu.memory_space<vmem>>, vector<8x128xf32>
      %95 = arith.addf %94, %93 : vector<8x128xf32>
      %c0_60 = arith.constant 0 : index
      %c0_61 = arith.constant 0 : index
      %96 = vector.load %arg17[%c0_60, %c0_61] : memref<8x128xf32, #tpu.memory_space<vmem>>, vector<8x128xf32>
      tpu.vector_store %arg17[%c0_60, %c0_61], %95 {strides = array<i32>} : memref<8x128xf32, #tpu.memory_space<vmem>>, vector<8x128xf32>,
      %c0_62 = arith.constant 0 : index
      %c0_63 = arith.constant 0 : index
      %97 = vector.load %arg16[%c0_62, %c0_63] : memref<8x128xf32, #tpu.memory_space<vmem>>, vector<8x128xf32>
      tpu.vector_store %arg16[%c0_62, %c0_63], %95 {strides = array<i32>} : memref<8x128xf32, #tpu.memory_space<vmem>>, vector<8x128xf32>,
    } else {
    }
    return
  }
  func.func @transform_0(%arg0: i32, %arg1: i32) -> (i32, i32) {
    %c0_i32 = arith.constant 0 : i32
    %c0_i32_0 = arith.constant 0 : i32
    %c0_i32_1 = arith.constant 0 : i32
    return %c0_i32, %c0_i32_0 : i32, i32
  }
  func.func @transform_1(%arg0: i32, %arg1: i32) -> (i32, i32) {
    %c0_i32 = arith.constant 0 : i32
    %c0_i32_0 = arith.constant 0 : i32
    return %arg1, %c0_i32 : i32, i32
  }
  func.func @transform_2(%arg0: i32, %arg1: i32) -> (i32, i32) {
    %c0_i32 = arith.constant 0 : i32
    %c0_i32_0 = arith.constant 0 : i32
    return %arg1, %c0_i32 : i32, i32
  }
  func.func @transform_3(%arg0: i32, %arg1: i32) -> (i32, i32) {
    %c0_i32 = arith.constant 0 : i32
    %c0_i32_0 = arith.constant 0 : i32
    return %arg1, %c0_i32 : i32, i32
  }
  func.func @transform_4(%arg0: i32, %arg1: i32) -> (i32, i32) {
    %c0_i32 = arith.constant 0 : i32
    %c0_i32_0 = arith.constant 0 : i32
    return %c0_i32, %arg1 : i32, i32
  }
  func.func @transform_5(%arg0: i32, %arg1: i32) -> (i32, i32, i32) {
    %c0_i32 = arith.constant 0 : i32
    %c0_i32_0 = arith.constant 0 : i32
    %c0_i32_1 = arith.constant 0 : i32
    return %arg0, %c0_i32, %c0_i32_0 : i32, i32, i32
  }
  func.func @transform_6(%arg0: i32, %arg1: i32) -> (i32, i32, i32) {
    %c0_i32 = arith.constant 0 : i32
    %c0_i32_0 = arith.constant 0 : i32
    %c0_i32_1 = arith.constant 0 : i32
    return %arg0, %c0_i32, %c0_i32_0 : i32, i32, i32
  }
  func.func @transform_7(%arg0: i32, %arg1: i32) -> (i32, i32, i32) {
    %c0_i32 = arith.constant 0 : i32
    %c0_i32_0 = arith.constant 0 : i32
    %c0_i32_1 = arith.constant 0 : i32
    return %arg0, %c0_i32, %c0_i32_0 : i32, i32, i32
  }
  func.func @transform_8(%arg0: i32, %arg1: i32) -> (i32, i32, i32) {
    %c0_i32 = arith.constant 0 : i32
    %c0_i32_0 = arith.constant 0 : i32
    %c0_i32_1 = arith.constant 0 : i32
    return %arg0, %c0_i32, %c0_i32_0 : i32, i32, i32
  }
  func.func @transform_9(%arg0: i32, %arg1: i32) -> (i32, i32, i32) {
    %c0_i32 = arith.constant 0 : i32
    %c0_i32_0 = arith.constant 0 : i32
    %c0_i32_1 = arith.constant 0 : i32
    return %arg0, %c0_i32, %c0_i32_0 : i32, i32, i32
  }
  func.func @transform_10(%arg0: i32, %arg1: i32) -> (i32, i32, i32) {
    %c0_i32 = arith.constant 0 : i32
    %c0_i32_0 = arith.constant 0 : i32
    %c0_i32_1 = arith.constant 0 : i32
    return %arg0, %c0_i32, %c0_i32_0 : i32, i32, i32
  }
  func.func @transform_11(%arg0: i32, %arg1: i32) -> (i32, i32, i32) {
    %c0_i32 = arith.constant 0 : i32
    %c0_i32_0 = arith.constant 0 : i32
    %c0_i32_1 = arith.constant 0 : i32
    return %arg0, %c0_i32, %c0_i32_0 : i32, i32, i32
  }
  func.func @transform_12(%arg0: i32, %arg1: i32) -> (i32, i32, i32) {
    %c0_i32 = arith.constant 0 : i32
    %c0_i32_0 = arith.constant 0 : i32
    %c0_i32_1 = arith.constant 0 : i32
    return %arg0, %c0_i32, %c0_i32_0 : i32, i32, i32
  }
  func.func @transform_13(%arg0: i32, %arg1: i32) -> (i32, i32, i32) {
    %c0_i32 = arith.constant 0 : i32
    %c0_i32_0 = arith.constant 0 : i32
    %c0_i32_1 = arith.constant 0 : i32
    return %arg0, %c0_i32, %c0_i32_0 : i32, i32, i32
  }
  func.func @transform_14(%arg0: i32, %arg1: i32) -> (i32, i32) {
    %c0_i32 = arith.constant 0 : i32
    %c0_i32_0 = arith.constant 0 : i32
    %c0_i32_1 = arith.constant 0 : i32
    return %c0_i32, %c0_i32_0 : i32, i32
  }
}

</mosaic_0001>

<bundles_post_ra>
// kernel: tpu_custom_call.1
= control target key start
LH: loop header
LB: loop body
LE: loop exit
PB: predicated region body
PF: predicated region fallthrough
CT: control target
= control target key end

     0   :  { %s3548_s0 = inlined_call_operand.hbm [shape: f32[8,128], index: 0, kind: input, shape index: {}]   ;;  %s3549_s1 = inlined_call_operand.vmem [shape: f32[128,1], index: 1, kind: input, shape index: {}]   ;;  %s3550_s2 = inlined_call_operand.hbm [shape: bf16[128,128], index: 2, kind: input, shape index: {}]   ;;  %s3551_s3 = inlined_call_operand.vmem [shape: s32[128,1], index: 3, kind: input, shape index: {}]   ;;  %s3552_s4 = inlined_call_operand.hbm [shape: s32[1,128], index: 4, kind: input, shape index: {}]   ;;  %s3553_s5 = inlined_call_operand.vmem [shape: bf16[2,128,128], index: 5, kind: input, shape index: {}]   ;;  %s3554_s6 = inlined_call_operand.vmem [shape: f32[2,1,128], index: 6, kind: input, shape index: {}]   ;;  %s3555_s7 = inlined_call_operand.vmem [shape: bf16[2,128,128], index: 7, kind: input, shape index: {}]   ;;  %s3556_s8 = inlined_call_operand.vmem [shape: f32[2,1,128], index: 8, kind: input, shape index: {}]   ;;  %s3557_s9 = inlined_call_operand.hbm [shape: bf16[2,128,128], index: 9, kind: input, shape index: {}]   ;;  %s3558_s10 = inlined_call_operand.hbm [shape: bf16[2,128,128], index: 10, kind: input, shape index: {}]   ;;  %s3559_s11 = inlined_call_operand.vmem [shape: f32[2,1,128], index: 11, kind: input, shape index: {}]   ;;  %s3560_s12 = inlined_call_operand.hbm [shape: bf16[2,128,128], index: 12, kind: input, shape index: {}]   ;;  %s3561_s13 = inlined_call_operand.vmem [shape: f32[2,1,128], index: 13, kind: input, shape index: {}]   ;;  %s3562_s14 = inlined_call_operand.hbm [shape: f32[8,128], index: 14, kind: output, shape index: {}]  }
   0x1   :  { %3573 = sst [smem:[#allocation26_spill]] %s3548_s0 }
   0x2   :  { %3574 = sst [smem:[#allocation27_spill]] %s3549_s1 }
   0x3   :  { %3575 = sst [smem:[#allocation28_spill]] %s3550_s2 }
   0x4   :  { %3576 = sst [smem:[#allocation29_spill]] %s3551_s3 }
   0x5   :  { %3577 = sst [smem:[#allocation30_spill]] %s3552_s4 }
   0x6   :  { %3578 = sst [smem:[#allocation31_spill]] %s3556_s8 }
   0x7   :  { %3579 = sst [smem:[#allocation32_spill]] %s3557_s9 }
   0x8   :  { %3580 = sst [smem:[#allocation33_spill]] %s3559_s11 }
   0x9   :  { %3581 = sst [smem:[#allocation34_spill]] %s3561_s13 }
   0xa   :  { %3582 = sst [smem:[#allocation35_spill]] %s3562_s14 }
   0xb   :  { %19 = vsyncpa [#allocation6], 0 }
   0xc   :  { %20 = vsyncpa [#allocation9], 0 }
   0xd   :  { %21 = vsyncpa [#allocation12], 0 }
   0xe   :  { %23 = vsyncpa [#allocation12 + $0x1], 0 }
   0xf   :  { %24 = vsyncpa [#allocation15], 0 }
  0x10   :  { %26 = vsyncpa [#allocation15 + $0x1], 0 }
  0x11   :  { %27 = vsyncpa [#allocation7], 0  ;;  %s2975_s29 = smov 0   ;;  %s2977_s30 = smov 0  }
  0x12   :  { %s2979_s15 = smov 0   ;;  %s2981_s16 = smov 0  }
  0x13   :  { %s2983_s17 = smov 0   ;;  %s2985_s18 = smov 0  }
  0x14 LB: > { %3583 = sst [smem:[#allocation22_spill]] %s2885_s17  ;;  %s3004_s19 = sadd.s32 4294967295, %s2889_s18   ;;  %s2889_s18 = sphi %s2985_s18, %s33_s18   ;;  %s2885_s17 = sphi %s2983_s17, %s3612_s17   ;;  %s2881_s16 = sphi %s2981_s16, %s3616_s16   ;;  %s2877_s15 = sphi %s2979_s15, %s3615_s15   ;;  %s2873_s30 = sphi %s2977_s30, %s3614_s30   ;;  %s2869_s29 = sphi %s2975_s29, %s3613_s29  }
  0x15   : > { %3584 = sst [smem:[#allocation23_spill]] %s2889_s18  ;;  %p294_p0 = scmp.ne.s32.totalorder %s2873_s30, %s2869_s29 }
  0x16   : > { %p295_p1 = scmp.eq.s32.totalorder %s3004_s19, 0  ;;  %p2109_p2 = scmp.ge.s32.totalorder %s2889_s18, 1 }
  0x17   : > { %p430_p3 = scmp.lt.s32.totalorder %s2889_s18, 3  ;;  %s3586_s2 = sld [smem:[#allocation28_spill]] }
  0x18   : > { %p3012_p4 = por %p295_p1, %p294_p0  ;;  %s2891_s25 = smov [#allocation8]  }
  0x19   : > { %p3019_p5 = pnand %p2109_p2, %p430_p3  ;;  %s467_s26 = sshll.u32 %s2891_s25, 4  ;;  %s468_s26 = int_to_ptr.vmem [resolvable:$true] %s467_s26 }
  0x1a   : > { %s3564_s28 = smov 64   ;;  %s3566_s29 = smov 4  }
  0x1b   : > { %p2453_p6 = pneg %p3019_p5  ;;  %s45_s21 = sadd.s32 1, %s2885_s17 }
  0x1c   : > { %p47_p8 = scmp.ge.s32.totalorder %s45_s21, 2  ;;  %s281_s22 = sadd.s32 1, %s2877_s15 }
  0x1d   : > { %s465_s23 = sshll.u32 %s3586_s2, 4  ;;  %p3027_p7 = pnand %p2453_p6, %p295_p1  ;;  %s466_s23 = int_to_ptr.hbm [resolvable:$true] %s465_s23 }
  0x1e   : > { %p288_p9 = scmp.ne.s32.totalorder %s2877_s15, %s2873_s30  ;;  %p289_p10 = scmp.eq.s32.totalorder %s2889_s18, 0 }
  0x1f   : > { %2459 = dma.hbm_to_vmem [thread:$0]  (!%p3027_p7), %s466_s23, 1024, %s468_s26, [#allocation9], %s3564_s28, %s3564_s28, %s3566_s29  }
  0x20   : > { %s3618_s21 = smov (%p47_p8, %s45_s21), 0  ;;  %p3043_p11 = por %p289_p10, %p288_p9 }
  0x21   : > { %3589 = sst [smem:[#allocation24_spill]] %s3618_s21  ;;  %p2476_p12 = scmp.lt.s32.totalorder %s2889_s18, 2 }
  0x22   : > { %s278_s2 = ssub.s32 %s2885_s17, %s3618_s21  ;;  %s531_s14 = sand.u32 1, %s2889_s18  }
  0x23   : > { %p279_p13 = scmp.eq.s32.totalorder %s278_s2, 0  ;;  %s3570_s1 = sand.u32 1, %s2877_s15  }
  0x24   : > { %s3053_s23 = sshll.u32 %s2885_s17, 6  ;;  %s3060_s28 = sshll.u32 %s3570_s1, 6 }
  0x25   : > { %s3056_s26 = scalar_select %p279_p13, %s2877_s15, %s281_s22  }
  0x26   : > { %s3592_s9 = sld [smem:[#allocation32_spill]]  ;;  %s535_s21 = scalar_lea.vmem [#allocation11], %s3060_s28 }
  0x27   : > { %3591 = sst [smem:[#allocation25_spill]] %s3056_s26  ;;  %s543_s2 = sshll.u32 %s535_s21, 4  ;;  %s544_s2 = int_to_ptr.vmem [resolvable:$true] %s543_s2 }
  0x28   : > { %p3071_p0 = pnand %p2476_p12, %p3043_p11  ;;  %s3594_s0 = sld [smem:[#allocation26_spill]] }
  0x29   : > { %s532_s29 = scalar_lea.sflag [#allocation12], %s531_s14  ;;  %s2894_s21 = smov [#allocation5]  }
  0x2a   : > { %s444_s25 = sshll.u32 %s2894_s21, 4  ;;  %s3597_s4 = sld [smem:[#allocation30_spill]]  ;;  %s445_s25 = int_to_ptr.vmem [resolvable:$true] %s444_s25 }
  0x2b   : > { %s2895_s1 = smov [#allocation10]   ;;  %s557_s18 = scalar_lea.vmem [#allocation13], %s3060_s28 }
  0x2c   : > { %s540_s13 = scalar_lea.hbm %s3592_s9, %s3053_s23  ;;  %s3596_s9 = smov 64  }
  0x2d   : > { %s541_s11 = sshll.u32 %s540_s13, 4  ;;  %s3595_s13 = smov 4   ;;  %s542_s11 = int_to_ptr.hbm [resolvable:$true] %s541_s11 }
  0x2e   : > { %s442_s3 = sshll.u32 %s3594_s0, 4  ;;  %s492_s14 = sshll.u32 %s2895_s1, 4  ;;  %s443_s3 = int_to_ptr.hbm [resolvable:$true] %s442_s3  ;;  %s493_s14 = int_to_ptr.vmem [resolvable:$true] %s492_s14 }
  0x2f   : > { %2466 = dma.hbm_to_vmem [thread:$0]  (!%p3071_p0), %s542_s11, 1024, %s544_s2, %s532_s29, %s3596_s9, %s3596_s9, %s3595_s13  }
  0x30   : > { %s490_s8 = sshll.u32 %s3597_s4, 4  ;;  %s562_s11 = scalar_lea.hbm %s3558_s10, %s3053_s23  ;;  %s491_s8 = int_to_ptr.hbm [resolvable:$true] %s490_s8 }
  0x31   : > { %2456 = dma.hbm_to_vmem [thread:$0]  (!%p3027_p7), %s443_s3, 128, %s445_s25, [#allocation6]  }
  0x32   : > { %s563_s2 = sshll.u32 %s562_s11, 4  ;;  %s565_s26 = sshll.u32 %s557_s18, 4  ;;  %s564_s2 = int_to_ptr.hbm [resolvable:$true] %s563_s2  ;;  %s566_s26 = int_to_ptr.vmem [resolvable:$true] %s565_s26 }
  0x33   : > { %2462 = dma.hbm_to_vmem [thread:$0]  (!%p3027_p7), %s491_s8, 16, %s493_s14, [#allocation9]  }
  0x34   : > { %2469 = dma.hbm_to_vmem [thread:$0]  (!%p3071_p0), %s564_s2, 1024, %s566_s26, %s532_s29, %s3596_s9, %s3596_s9, %s3595_s13  }
  0x35   : > { %s590_s0 = scalar_lea.hbm %s3560_s12, %s3053_s23  ;;  %s585_s1 = scalar_lea.vmem [#allocation14], %s3060_s28 }
  0x36   : > { %s591_s25 = sshll.u32 %s590_s0, 4  ;;  %s593_s17 = sshll.u32 %s585_s1, 4  ;;  %s592_s25 = int_to_ptr.hbm [resolvable:$true] %s591_s25  ;;  %s594_s17 = int_to_ptr.vmem [resolvable:$true] %s593_s17 }
  0x37   : > { %s3598_s27 = sand.u32 1, %s2877_s15   ;;  %611 = sbr.rel (%p3019_p5) target bundleno = 992 (0x3e0), region = 76 }
  0x38   : > { %s582_s8 = scalar_lea.sflag [#allocation15], %s3598_s27 }
  0x39   : > { %2472 = dma.hbm_to_vmem [thread:$0]  (!%p3071_p0), %s592_s25, 1024, %s594_s17, %s582_s8, %s3596_s9, %s3596_s9, %s3595_s13  }
  0x3c   : > { %2848 = dma.done.wait (%p295_p1), [#allocation6], 128  }
  0x3d   : > { %2850 = vsyncadd (%p295_p1), [#allocation6], 4294967168 }
  0x3e   : > { %2852 = dma.done.wait (%p295_p1), [#allocation9], 1040  }
  0x3f   : > { %2854 = vsyncadd (%p295_p1), [#allocation9], 4294966256  ;;  %s628_s28 = sand.u32 1, %s3004_s19   ;;  %s630_s9 = sand.u32 1, %s2873_s30  }
  0x40   : > { %s2129_s23 = sshll.u32 %s630_s9, 6  ;;  %s629_s24 = scalar_lea.sflag [#allocation12], %s628_s28 }
  0x41   : > { %s3124_s22 = scalar_lea.vmem [#allocation11], %s2129_s23 }
  0x42   : > { %2856 = dma.done.wait (%p3012_p4), %s629_s24, 2048  }
  0x43   : > { %2858 = vsyncadd (%p3012_p4), %s629_s24, 4294965248  ;;  %s3130_s29 = scalar_lea.vmem [#allocation13], %s2129_s23  ;;  %s649_s13 = scalar_lea.sflag [#allocation15], %s630_s9 }
  0x44   : > { %s3132_s14 = scalar_lea.vmem [#allocation14], %s2129_s23 }
  0x45   : > { %2860 = dma.done.wait (%p3012_p4), %s649_s13, 1024  }
  0x46   : > { %2862 = vsyncadd (%p3012_p4), %s649_s13, 4294966272  ;;  %p748_p1 = scmp.lt.s32.totalorder %s2881_s16, 1  ;;  %p771_p2 = scmp.eq.s32.totalorder %s2881_s16, 0 }
  0x47   : > { %s3599_s8 = sld [smem:[#allocation31_spill]]  ;;  %v777_v0 = vld [vmem:[#allocation5] sm:$0xff] (%p771_p2) }
  0x48   : > { %s3620_s16 = smov (!%p748_p1, %s2881_s16), 1  ;;  %s3600_s24 = sld [smem:[#allocation33_spill]]  ;;  %778 = vst [vmem:[#allocation2] sm:$0xff] (%p771_p2), %v777_v0 }
  0x49   : > { %s2380_s11 = sshll.u32 %s3620_s16, 6  ;;  %s3601_s26 = sld [smem:[#allocation34_spill]] }
  0x4a   : > { %s3151_s21 = scalar_lea.vmem %s3553_s5, %s2380_s11  ;;  %s3156_s1 = scalar_lea.vmem %s3555_s7, %s2380_s11 }
  0x4b   : > { %776 = sbr.rel (!%p771_p2) target bundleno = 80 (0x50), region = 104 }
  0x4d   : > { %s763_s28 = scalar_lea.vmem %s3599_s8, %s3620_s16 }
  0x4e   : > { %s766_s13 = scalar_lea.vmem %s3600_s24, %s3620_s16 }
  0x4f   : > { %s769_s4 = scalar_lea.vmem %s3601_s26, %s3620_s16 }
  0x50 PF: > { %s3602_s11 = sld [smem:[#allocation29_spill]]  ;;  %v2390_v2 = vld [vmem:[%s3124_s22 + $0x38] sm:$0xff]  ;;  %v2406_v3 = vld [vmem:[%s3151_s21 + $0x38] sm:$0xff]  ;;  %v2896_v4 = vmov 0   ;;  %v2389_v5 = vld [vmem:[%s3124_s22 + $0x30] sm:$0xff]  ;;  %vm1598_vm9 = vcmask 1043456  }
  0x51   : > { %2539 = vset.pattern.permute.xlu0 %v2896_v4  ;;  %2540 = vset.pattern.permute.xlu1 %v2896_v4  ;;  %v2405_v7 = vld [vmem:[%s3151_s21 + $0x30] sm:$0xff]  ;;  %v2388_v8 = vld [vmem:[%s3124_s22 + $0x28] sm:$0xff]  ;;  %v2404_v10 = vld [vmem:[%s3151_s21 + $0x28] sm:$0xff]  ;;  %s3603_s3 = sld [smem:[#allocation27_spill]]  ;;  %vm1573_vm11 = vcmask 64512   ;;  %s2899_s26 = smov [#allocation16]  }
  0x52   : > { %848 = vmatpush.bf16.msra.mxu0 %v2390_v2  ;;  %995 = vmatpush.bf16.msra.mxu1 %v2406_v3  ;;  %v2387_v12 = vld [vmem:[%s3124_s22 + $0x20] sm:$0xff]  ;;  %v2403_v13 = vld [vmem:[%s3151_s21 + $0x20] sm:$0xff]  ;;  %v2386_v14 = vld [vmem:[%s3124_s22 + $0x18] sm:$0xff]  ;;  %v1458_v3 = vlaneseq  ;;  %s1879_s0 = sshll.u32 %s2899_s26, 4  ;;  %s3608_s27 = sld [smem:[#allocation35_spill]]  ;;  %s1880_s0 = int_to_ptr.vmem [resolvable:$true] %s1879_s0 }
  0x53   : > { %2541 = vset.pattern.permute.xlu2 %v2896_v4  ;;  %v2402_v16 = vld [vmem:[%s3151_s21 + $0x18] sm:$0xff]  ;;  %v2385_v18 = vld [vmem:[%s3124_s22 + $0x10] sm:$0xff]  ;;  %v2401_v19 = vld [vmem:[%s3151_s21 + $0x10] sm:$0xff]  ;;  %p2480_p3 = scmp.eq.s32.totalorder %s3004_s19, 1 }
  0x54   : > { %v2384_v20 = vld [vmem:[%s3124_s22 + $0x8] sm:$0xff]  ;;  %v2400_v22 = vld [vmem:[%s3151_s21 + $0x8] sm:$0xff]  ;;  %v2383_v24 = vld [vmem:[%s3124_s22] sm:$0xff] }
  0x55   : > { %v782_v25 = vld [vmem:[#allocation2] sm:$0xff]  ;;  %v2391_v29 = vld [vmem:[#allocation8] sm:$0xff]  ;;  %v2392_v36 = vld [vmem:[#allocation8 + $0x8] sm:$0xff] }
  0x56   : > { %v1441_v1 = vld [vmem:[%s3602_s11] sm:$0xff]  ;;  %v1443_v6 = vld [vmem:[%s3602_s11 + $0x10] sm:$0xff]  ;;  %849 = vmatpush.bf16.msra.mxu0 %v2389_v5  ;;  %996 = vmatpush.bf16.msra.mxu1 %v2405_v7  ;;  %v1442_v9 = vld [vmem:[%s3602_s11 + $0x8] sm:$0xff]  ;;  %v783_v28 = vpack.c.bf16 %v782_v25, %v782_v25  ;;  %v3296_v5 = vand.u32 127, %v1458_v3 }
  0x57   : > { %1461 = vperm.xlu0 %2539, %v1441_v1   ;;  %1467 = vperm.xlu1 %2540, %v1443_v6   ;;  %v1444_v11 = vld [vmem:[%s3602_s11 + $0x18] sm:$0xff]  ;;  %v1447_v15 = vld [vmem:[%s3602_s11 + $0x30] sm:$0xff]  ;;  %v1450_v21 = vld [vmem:[%s3602_s11 + $0x48] sm:$0xff] }
  0x58   : > { %v1448_v17 = vld [vmem:[%s3602_s11 + $0x38] sm:$0xff]  ;;  %v1451_v23 = vld [vmem:[%s3602_s11 + $0x50] sm:$0xff]  ;;  %v1445_v26 = vld [vmem:[%s3602_s11 + $0x20] sm:$0xff]  ;;  %s1881_s8 = sshll.u32 %s3608_s27, 4  ;;  %s1882_s8 = int_to_ptr.hbm [resolvable:$true] %s1881_s8 }
  0x59   : > { %v2399_v27 = vld [vmem:[%s3151_s21] sm:$0xff]  ;;  %1473 = vperm.xlu2 %2541, %v1445_v26   ;;  %v1454_v31 = vld [vmem:[%s3602_s11 + $0x68] sm:$0xff]  ;;  %v1456_v33 = vld [vmem:[%s3602_s11 + $0x78] sm:$0xff]  ;;  %s3604_s21 = scalar_lea.vmem %s3554_s6, %s3620_s16 }
  0x5a   : > { %850 = vmatpush.bf16.msra.mxu0 %v2388_v8  ;;  %997 = vmatpush.bf16.msra.mxu1 %v2404_v10  ;;  %v1453_v30 = vld [vmem:[%s3602_s11 + $0x60] sm:$0xff]  ;;  %v1446_v32 = vld [vmem:[%s3602_s11 + $0x28] sm:$0xff]  ;;  %v1343_v34 = vld [vmem:[%s3603_s3 + $0x70] sm:$0xff]  ;;  %v2897_v10 = vmov 0.0  }
  0x5b   : > { %v1449_v35 = vld [vmem:[%s3602_s11 + $0x40] sm:$0xff]  ;;  %v1342_v38 = vld [vmem:[%s3603_s3 + $0x68] sm:$0xff]  ;;  %v1452_v39 = vld [vmem:[%s3602_s11 + $0x58] sm:$0xff] }
  0x5c   : > { %v1341_v37 = vld [vmem:[%s3603_s3 + $0x60] sm:$0xff]  ;;  %v1340_v40 = vld [vmem:[%s3603_s3 + $0x58] sm:$0xff]  ;;  %v1455_v42 = vld [vmem:[%s3602_s11 + $0x70] sm:$0xff] }
  0x5d   : > { %v1337_v41 = vld [vmem:[%s3603_s3 + $0x40] sm:$0xff]  ;;  %v1335_v44 = vld [vmem:[%s3603_s3 + $0x30] sm:$0xff]  ;;  %v1336_v45 = vld [vmem:[%s3603_s3 + $0x38] sm:$0xff] }
  0x5e   : > { %851 = vmatpush.bf16.msra.mxu0 %v2387_v12  ;;  %998 = vmatpush.bf16.msra.mxu1 %v2403_v13  ;;  %v2393_v43 = vld [vmem:[#allocation8 + $0x10] sm:$0xff]  ;;  %v1344_v46 = vld [vmem:[%s3603_s3 + $0x78] sm:$0xff]  ;;  %v1334_v47 = vld [vmem:[%s3603_s3 + $0x28] sm:$0xff] }
  0x5f   : > { %1464 = vperm.xlu0 %2539, %v1442_v9   ;;  %1470 = vperm.xlu1 %2540, %v1444_v11   ;;  %v1331_v48 = vld [vmem:[%s3603_s3 + $0x10] sm:$0xff]  ;;  %v2394_v50 = vld [vmem:[#allocation8 + $0x18] sm:$0xff]  ;;  %v1329_v51 = vld [vmem:[%s3603_s3] sm:$0xff] }
  0x60   : > { %v1339_v49 = vld [vmem:[%s3603_s3 + $0x50] sm:$0xff]  ;;  %v1330_v52 = vld [vmem:[%s3603_s3 + $0x8] sm:$0xff]  ;;  %v1333_v54 = vld [vmem:[%s3603_s3 + $0x20] sm:$0xff] }
  0x61   : > { %1476 = vperm.xlu2 %2541, %v1446_v32   ;;  %v1338_v53 = vld [vmem:[%s3603_s3 + $0x48] sm:$0xff]  ;;  %v2395_v55 = vld [vmem:[#allocation8 + $0x20] sm:$0xff]  ;;  %v1332_v56 = vld [vmem:[%s3603_s3 + $0x18] sm:$0xff] }
  0x62   : > { %852 = vmatpush.bf16.msra.mxu0 %v2386_v14  ;;  %999 = vmatpush.bf16.msra.mxu1 %v2402_v16  ;;  %v2396_v57 = vld [vmem:[#allocation8 + $0x28] sm:$0xff]  ;;  %v2397_v63 = vld [vmem:[#allocation8 + $0x30] sm:$0xff]  ;;  %v2413_v7 = vld [vmem:[%s3156_s1 + $0x30] sm:$0xff] }
  0x63   : > { %v2414_v4 = vld [vmem:[%s3156_s1 + $0x38] sm:$0xff]  ;;  %v2398_v12 = vld [vmem:[#allocation8 + $0x38] sm:$0xff] }
  0x64   : > { %1280 = vmatpush.bf16.msra.mxu2 %v2414_v4  ;;  %v2412_v14 = vld [vmem:[%s3156_s1 + $0x28] sm:$0xff] }
  0x66   : > { %853 = vmatpush.bf16.msra.mxu0 %v2385_v18  ;;  %1000 = vmatpush.bf16.msra.mxu1 %v2401_v19 }
  0x67   : > { %1479 = vperm.xlu0 %2539, %v1447_v15   ;;  %1482 = vperm.xlu1 %2540, %v1448_v17   ;;  %v2411_v17 = vld [vmem:[%s3156_s1 + $0x20] sm:$0xff] }
  0x68   : > { %1281 = vmatpush.bf16.msra.mxu2 %v2413_v7 }
  0x69   : > { %1485 = vperm.xlu2 %2541, %v1449_v35  }
  0x6a   : > { %854 = vmatpush.bf16.msra.mxu0 %v2384_v20  ;;  %1001 = vmatpush.bf16.msra.mxu1 %v2400_v22 }
  0x6c   : > { %1282 = vmatpush.bf16.msra.mxu2 %v2412_v14 }
  0x6e   : > { %855 = vmatpush.bf16.msra.mxu0 %v2383_v24  ;;  %1002 = vmatpush.bf16.msra.mxu1 %v2399_v27  ;;  %v2409_v27 = vld [vmem:[%s3156_s1 + $0x10] sm:$0xff] }
  0x6f   : > { %1488 = vperm.xlu0 %2539, %v1450_v21   ;;  %1491 = vperm.xlu1 %2540, %v1451_v23   ;;  %v2410_v23 = vld [vmem:[%s3156_s1 + $0x18] sm:$0xff] }
  0x70   : > { %1283 = vmatpush.bf16.msra.mxu2 %v2411_v17 }
  0x71   : > { %856 = vmatmul.bf16.vlgmr.msra.gmra.mxu0 %v783_v28  ;;  %1003 = vmatmul.bf16.vlgmr.msra.gmra.mxu1 %v2391_v29  ;;  %v3340_v29 = vld [vmem:[%s3604_s21] ss:$0 sm:$0xff] }
  0x72   : > { %1494 = vperm.xlu2 %2541, %v1452_v39  }
  0x74   : > { %1284 = vmatpush.bf16.msra.mxu2 %v2410_v23 }
  0x77   : > { %1497 = vperm.xlu0 %2539, %v1453_v30   ;;  %1500 = vperm.xlu1 %2540, %v1454_v31  }
  0x78   : > { %1285 = vmatpush.bf16.msra.mxu2 %v2409_v27 }
  0x7a   : > { %1503 = vperm.xlu2 %2541, %v1455_v42  }
  0x7f   : > { %1506 = vperm.xlu0 %2539, %v1456_v33   ;;  %1417 = vperm.xlu1 %2540, %v1343_v34  }
  0x81   : > { %1008 = vmatmul.bf16.gmra.mxu1 %v2392_v36 }
  0x82   : > { %1422 = vperm.xlu2 %2541, %v1344_v46  }
  0x87   : > { %1407 = vperm.xlu0 %2539, %v1341_v37   ;;  %1412 = vperm.xlu1 %2540, %v1342_v38   ;;  %v2408_v37 = vld [vmem:[%s3156_s1 + $0x8] sm:$0xff] }
  0x88   : > { %1286 = vmatpush.bf16.msra.mxu2 %v2408_v37 }
  0x8a   : > { %1397 = vperm.xlu2 %2541, %v1339_v49  }
  0x8f   : > { %1402 = vperm.xlu0 %2539, %v1340_v40   ;;  %1387 = vperm.xlu1 %2540, %v1337_v41  }
  0x91   : > { %1013 = vmatmul.bf16.gmra.mxu1 %v2393_v43 }
  0x92   : > { %1392 = vperm.xlu2 %2541, %v1338_v53  }
  0x97   : > { %1377 = vperm.xlu0 %2539, %v1335_v44   ;;  %1382 = vperm.xlu1 %2540, %v1336_v45   ;;  %v2407_v44 = vld [vmem:[%s3156_s1] sm:$0xff] }
  0x98   : > { %1287 = vmatpush.bf16.msra.mxu2 %v2407_v44 }
  0x9a   : > { %1367 = vperm.xlu2 %2541, %v1333_v54  }
  0x9f   : > { %1372 = vperm.xlu0 %2539, %v1334_v47   ;;  %1357 = vperm.xlu1 %2540, %v1331_v48  }
  0xa1   : > { %1018 = vmatmul.bf16.gmra.mxu1 %v2394_v50 }
  0xa2   : > { %1362 = vperm.xlu2 %2541, %v1332_v56  }
  0xa7   : > { %1347 = vperm.xlu0 %2539, %v1329_v51   ;;  %1352 = vperm.xlu1 %2540, %v1330_v52  }
  0xb1   : > { %1023 = vmatmul.bf16.gmra.mxu1 %v2395_v55 }
  0xb3   : > { %v3284_v60 = vpop.permute.xlu2 %1473 }
  0xb4   : > { %vm1512_vm14 = vcmp.eq.s32.totalorder %v3296_v5, %v3284_v60 }
  0xbb   : > { %v3288_v0 = vpop.permute.xlu2 %1476 }
  0xbc   : > { %vm1513_vm15 = vcmp.eq.s32.totalorder %v3296_v5, %v3288_v0 }
  0xc1   : > { %1028 = vmatmul.bf16.gmra.mxu1 %v2396_v57 }
  0xc3   : > { %v1486_v6 = vpop.permute.xlu2 %1485 }
  0xc4   : > { %vm1516_vm2 = vcmp.eq.s32.totalorder %v3296_v5, %v1486_v6 }
  0xc5   : > { %v3310_v15 = vsel %vm1516_vm2, 1.0, %v2897_v10 }
  0xc9   : > { %v1462_v58 = vpop.permute.xlu0 %1461  ;;  %v3282_v59 = vpop.permute.xlu1 %1467 }
  0xca   : > { %vm1508_vm6 = vcmp.eq.s32.totalorder %v3296_v5, %v1462_v58  ;;  %vm1510_vm12 = vcmp.eq.s32.totalorder %v3296_v5, %v3282_v59 }
  0xcb   : > { %v2281_v30 = vsel %vm1508_vm6, 1.0, %v2897_v10  ;;  %v2283_v53 = vsel %vm1510_vm12, 1.0, %v2897_v10 }
  0xcc   : > { %v1495_v20 = vpop.permute.xlu2 %1494 }
  0xcd   : > { %vm1519_vm5 = vcmp.eq.s32.totalorder %v3296_v5, %v1495_v20  ;;  %v2286_v20 = vsel %vm1513_vm15, 1.0, %v2897_v10 }
  0xce   : > { %v3328_v25 = vsel %vm1519_vm5, 1.0, %v2897_v10 }
  0xd1   : > { %v1465_v61 = vpop.permute.xlu0 %1464  ;;  %v3286_v62 = vpop.permute.xlu1 %1470  ;;  %1033 = vmatmul.bf16.gmra.mxu1 %v2397_v63 }
  0xd2   : > { %vm1509_vm7 = vcmp.eq.s32.totalorder %v3296_v5, %v1465_v61  ;;  %vm1511_vm13 = vcmp.eq.s32.totalorder %v3296_v5, %v3286_v62 }
  0xd3   : > { %v2282_v31 = vsel %vm1509_vm7, 1.0, %v2897_v10  ;;  %v2284_v54 = vsel %vm1511_vm13, 1.0, %v2897_v10 }
  0xd4   : > { %v1504_v36 = vpop.permute.xlu2 %1503  ;;  %v1556_v39 = vpack.c.bf16 %v2282_v31, %v2281_v30  ;;  %v1557_v61 = vpack.c.bf16 %v2284_v54, %v2283_v53 }
  0xd5   : > { %vm1522_vm10 = vcmp.eq.s32.totalorder %v3296_v5, %v1504_v36 }
  0xd6   : > { %v3352_v41 = vsel %vm1522_vm10, 1.0, %v2897_v10 }
  0xd9   : > { %v3290_v1 = vpop.permute.xlu0 %1479  ;;  %v3292_v2 = vpop.permute.xlu1 %1482 }
  0xe1   : > { %v1489_v8 = vpop.permute.xlu0 %1488  ;;  %v1492_v9 = vpop.permute.xlu1 %1491  ;;  %1038 = vmatmul.bf16.gmra.mxu1 %v2398_v12 }
  0xe2   : > { %vm1517_vm0 = vcmp.eq.s32.totalorder %v3296_v5, %v1489_v8  ;;  %vm1518_vm1 = vcmp.eq.s32.totalorder %v3296_v5, %v1492_v9 }
  0xe3   : > { %v3301_v11 = vsel %vm1517_vm0, 1.0, %v2897_v10  ;;  %v3305_v13 = vsel %vm1518_vm1, 1.0, %v2897_v10  ;;  %vm1514_vm0 = vcmp.eq.s32.totalorder %v3296_v5, %v3290_v1  ;;  %vm1515_vm1 = vcmp.eq.s32.totalorder %v3296_v5, %v3292_v2 }
  0xe4   : > { %v1560_v16 = vpack.c.bf16 %v3301_v11, %v3310_v15  ;;  %v1561_v26 = vpack.c.bf16 %v3328_v25, %v3305_v13 }
  0xe9   : > { %v1498_v18 = vpop.permute.xlu0 %1497  ;;  %v1501_v19 = vpop.permute.xlu1 %1500 }
  0xea   : > { %vm1520_vm3 = vcmp.eq.s32.totalorder %v3296_v5, %v1498_v18  ;;  %vm1521_vm4 = vcmp.eq.s32.totalorder %v3296_v5, %v1501_v19  ;;  %v2285_v19 = vsel %vm1512_vm14, 1.0, %v2897_v10 }
  0xeb   : > { %v3317_v21 = vsel %vm1520_vm3, 1.0, %v2897_v10  ;;  %v3321_v22 = vsel %vm1521_vm4, 1.0, %v2897_v10  ;;  %v1558_v0 = vpack.c.bf16 %v2286_v20, %v2285_v19 }
  0xec   : > { %v1562_v24 = vpack.c.bf16 %v3321_v22, %v3317_v21 }
  0xee   : > { %v857_v33 = vpop.f32.mrf.mxu0  ;;  %v1004_v35 = vpop.f32.mrf.mxu1 }
  0xef   : > { %v1572_v34 = vpack.c.bf16 %v857_v33, %v857_v33  ;;  %v1005_v38 = vadd.f32 %v3340_v29, %v1004_v35 }
  0xf1   : > { %v1507_v28 = vpop.permute.xlu0 %1506  ;;  %v1600_v40 = vsel %vm1598_vm9, %v1572_v34, 0  ;;  %v1060_v42 = vand.u32 2147483647, %v1005_v38  ;;  %v1044_v23 = vmax.f32 %v1005_v38, 0.0 }
  0xf2   : > { %vm1523_vm8 = vcmp.eq.s32.totalorder %v3296_v5, %v1507_v28  ;;  %1609 = vmatpush.bf16.msra.mxu3 %v1600_v40 }
  0xf3   : > { %v3346_v32 = vsel %vm1523_vm8, 1.0, %v2897_v10  ;;  %v1076_v45 = vsub.f32 0.0, %v1060_v42 }
  0xf4   : > { %v1563_v43 = vpack.c.bf16 %v3346_v32, %v3352_v41 }
  0xf5   : > { %2298 = vmatmul.msk.bf16.vlgmr.msra.gmra.mxu3 %vm1573_vm11, %v1556_v39  ;;  %v1092_v46 = vmul.f32 1.442695, %v1076_v45 }
  0xf6   : > { %v859_v47 = vpop.f32.mrf.mxu0  ;;  %v1006_v48 = vpop.f32.mrf.mxu1 }
  0xf7   : > { %2547 = vpow2.f32 %v1092_v46  ;;  %v1007_v49 = vadd.f32 %v3340_v29, %v1006_v48 }
  0xf9   : > { %v1061_v50 = vand.u32 2147483647, %v1007_v49  ;;  %v1045_v30 = vmax.f32 %v1007_v49, 0.0 }
  0xfb   : > { %v1077_v51 = vsub.f32 0.0, %v1061_v50 }
  0xfd   : > { %v2548_v52 = vpop.eup %2547  ;;  %v1094_v55 = vmul.f32 1.442695, %v1077_v51 }
  0xfe   : > { %v1124_v56 = vadd.f32 1.0, %v2548_v52  ;;  %v1009_v57 = vpop.f32.mrf.mxu1 }
  0xff   : > { %2549 = vpow2.f32 %v1094_v55  ;;  %v3366_v58 = vadd.f32 %v3340_v29, %v1009_v57  ;;  %v2287_v57 = vsel %vm1514_vm0, 1.0, %v2897_v10 }
 0x100   : > { %2551 = vlog2.f32 %v1124_v56 }
 0x101   : > { %v1062_v63 = vand.u32 2147483647, %v3366_v58  ;;  %v1046_v54 = vmax.f32 %v3366_v58, 0.0 }
 0x103   : > { %v1078_v59 = vsub.f32 0.0, %v1062_v63 }
 0x105   : > { %2299 = vmatmul.msk.bf16.gmra.mxu3 %vm1573_vm11, %v1557_v61  ;;  %v2550_v62 = vpop.eup %2549  ;;  %v1096_v4 = vmul.f32 1.442695, %v1078_v59  ;;  %v2288_v61 = vsel %vm1515_vm1, 1.0, %v2897_v10 }
 0x106   : > { %v1125_v6 = vadd.f32 1.0, %v2550_v62  ;;  %v1011_v7 = vpop.f32.mrf.mxu1  ;;  %v2552_v9 = vpop.eup %2551 }
 0x107   : > { %2553 = vpow2.f32 %v1096_v4  ;;  %v1012_v8 = vadd.f32 %v3340_v29, %v1011_v7  ;;  %v1141_v17 = vmul.f32 0.6931472, %v2552_v9  ;;  %v1559_v7 = vpack.c.bf16 %v2288_v61, %v2287_v57 }
 0x108   : > { %2555 = vlog2.f32 %v1125_v6 }
 0x109   : > { %v1063_v12 = vand.u32 2147483647, %v1012_v8  ;;  %v1172_v35 = vadd.f32 %v1141_v17, %v1044_v23  ;;  %v1047_v63 = vmax.f32 %v1012_v8, 0.0 }
 0x10b   : > { %v1079_v14 = vsub.f32 0.0, %v1063_v12  ;;  %v2233_v40 = vadd.f32 -0.6931472, %v1172_v35 }
 0x10d   : > { %v2554_v18 = vpop.eup %2553  ;;  %v1098_v27 = vmul.f32 1.442695, %v1079_v14 }
 0x10e   : > { %v2556_v28 = vpop.eup %2555  ;;  %v1126_v31 = vadd.f32 1.0, %v2554_v18  ;;  %v1014_v33 = vpop.f32.mrf.mxu1 }
 0x10f   : > { %2557 = vpow2.f32 %v1098_v27  ;;  %v3378_v34 = vadd.f32 %v3340_v29, %v1014_v33  ;;  %v1143_v60 = vmul.f32 0.6931472, %v2556_v28 }
 0x110   : > { %2559 = vlog2.f32 %v1126_v31 }
 0x111   : > { %v1064_v36 = vand.u32 2147483647, %v3378_v34  ;;  %v1173_v37 = vadd.f32 %v1143_v60, %v1045_v30  ;;  %v1048_v31 = vmax.f32 %v3378_v34, 0.0 }
 0x113   : > { %v1080_v39 = vsub.f32 0.0, %v1064_v36  ;;  %v2234_v42 = vadd.f32 -0.6931472, %v1173_v37 }
 0x115   : > { %2300 = vmatmul.msk.bf16.gmra.mxu3 %vm1573_vm11, %v1558_v0  ;;  %v2558_v38 = vpop.eup %2557  ;;  %v1100_v44 = vmul.f32 1.442695, %v1080_v39  ;;  %v1204_v45 = vpack.c.bf16 %v2234_v42, %v2233_v40 }
 0x116   : > { %v1127_v46 = vadd.f32 1.0, %v2558_v38  ;;  %v1016_v47 = vpop.f32.mrf.mxu1  ;;  %v2560_v49 = vpop.eup %2559 }
 0x117   : > { %2561 = vpow2.f32 %v1100_v44  ;;  %v1017_v48 = vadd.f32 %v3340_v29, %v1016_v47  ;;  %1288 = vmatmul.bf16.vlgmr.msra.gmra.mxu2 %v1204_v45  ;;  %v1145_v52 = vmul.f32 0.6931472, %v2560_v49 }
 0x118   : > { %2563 = vlog2.f32 %v1127_v46 }
 0x119   : > { %v1065_v50 = vand.u32 2147483647, %v1017_v48  ;;  %v1174_v2 = vadd.f32 %v1145_v52, %v1046_v54  ;;  %v1049_v35 = vmax.f32 %v1017_v48, 0.0 }
 0x11b   : > { %v1081_v51 = vsub.f32 0.0, %v1065_v50  ;;  %v2235_v9 = vadd.f32 -0.6931472, %v1174_v2 }
 0x11d   : > { %v2562_v53 = vpop.eup %2561  ;;  %v1102_v55 = vmul.f32 1.442695, %v1081_v51 }
 0x11e   : > { %v2564_v56 = vpop.eup %2563  ;;  %v1128_v59 = vadd.f32 1.0, %v2562_v53  ;;  %v1019_v62 = vpop.f32.mrf.mxu1 }
 0x11f   : > { %2565 = vpow2.f32 %v1102_v55  ;;  %v3391_v1 = vadd.f32 %v3340_v29, %v1019_v62  ;;  %v1147_v4 = vmul.f32 0.6931472, %v2564_v56 }
 0x120   : > { %2567 = vlog2.f32 %v1128_v59 }
 0x121   : > { %v1066_v5 = vand.u32 2147483647, %v3391_v1  ;;  %v1175_v6 = vadd.f32 %v1147_v4, %v1047_v63  ;;  %v1050_v57 = vmax.f32 %v3391_v1, 0.0 }
 0x123   : > { %v1082_v58 = vsub.f32 0.0, %v1066_v5  ;;  %v2236_v12 = vadd.f32 -0.6931472, %v1175_v6 }
 0x125   : > { %2301 = vmatmul.msk.bf16.gmra.mxu3 %vm1573_vm11, %v1559_v7  ;;  %v2566_v10 = vpop.eup %2565  ;;  %v1104_v8 = vmul.f32 1.442695, %v1082_v58  ;;  %v1205_v14 = vpack.c.bf16 %v2236_v12, %v2235_v9 }
 0x126   : > { %v1129_v17 = vadd.f32 1.0, %v2566_v10  ;;  %v1021_v18 = vpop.f32.mrf.mxu1  ;;  %v2568_v20 = vpop.eup %2567 }
 0x127   : > { %2569 = vpow2.f32 %v1104_v8  ;;  %v1022_v19 = vadd.f32 %v3340_v29, %v1021_v18  ;;  %1293 = vmatmul.bf16.gmra.mxu2 %v1205_v14  ;;  %v1149_v28 = vmul.f32 0.6931472, %v2568_v20 }
 0x128   : > { %2571 = vlog2.f32 %v1129_v17 }
 0x129   : > { %v1067_v23 = vand.u32 2147483647, %v1022_v19  ;;  %v1176_v40 = vadd.f32 %v1149_v28, %v1048_v31 }
 0x12b   : > { %v1083_v27 = vsub.f32 0.0, %v1067_v23  ;;  %v2237_v45 = vadd.f32 -0.6931472, %v1176_v40 }
 0x12d   : > { %v2570_v30 = vpop.eup %2569  ;;  %v1106_v33 = vmul.f32 1.442695, %v1083_v27 }
 0x12e   : > { %v2572_v60 = vpop.eup %2571  ;;  %v1130_v0 = vadd.f32 1.0, %v2570_v30  ;;  %v1024_v36 = vpop.f32.mrf.mxu1 }
 0x12f   : > { %2573 = vpow2.f32 %v1106_v33  ;;  %v3398_v37 = vadd.f32 %v3340_v29, %v1024_v36  ;;  %v1151_v39 = vmul.f32 0.6931472, %v2572_v60 }
 0x130   : > { %2575 = vlog2.f32 %v1130_v0 }
 0x131   : > { %v1068_v42 = vand.u32 2147483647, %v3398_v37  ;;  %v1177_v38 = vadd.f32 %v1151_v39, %v1049_v35  ;;  %v1052_v27 = vmax.f32 %v3398_v37, 0.0 }
 0x133   : > { %v1084_v44 = vsub.f32 0.0, %v1068_v42  ;;  %v2238_v46 = vadd.f32 -0.6931472, %v1177_v38 }
 0x135   : > { %2302 = vmatmul.msk.bf16.gmra.mxu3 %vm1573_vm11, %v1560_v16  ;;  %v2574_v34 = vpop.eup %2573  ;;  %v1108_v47 = vmul.f32 1.442695, %v1084_v44  ;;  %v1206_v48 = vpack.c.bf16 %v2238_v46, %v2237_v45  ;;  %v1051_v16 = vmax.f32 %v1022_v19, 0.0 }
 0x136   : > { %v1131_v49 = vadd.f32 1.0, %v2574_v34  ;;  %v1026_v50 = vpop.f32.mrf.mxu1  ;;  %v2576_v52 = vpop.eup %2575 }
 0x137   : > { %2577 = vpow2.f32 %v1108_v47  ;;  %v1027_v51 = vadd.f32 %v3340_v29, %v1026_v50  ;;  %1298 = vmatmul.bf16.gmra.mxu2 %v1206_v48  ;;  %v1153_v55 = vmul.f32 0.6931472, %v2576_v52 }
 0x138   : > { %2579 = vlog2.f32 %v1131_v49 }
 0x139   : > { %v1069_v53 = vand.u32 2147483647, %v1027_v51  ;;  %v1178_v4 = vadd.f32 %v1153_v55, %v1050_v57 }
 0x13b   : > { %v1085_v54 = vsub.f32 0.0, %v1069_v53  ;;  %v2239_v7 = vadd.f32 -0.6931472, %v1178_v4 }
 0x13d   : > { %v2578_v56 = vpop.eup %2577  ;;  %v1110_v11 = vmul.f32 1.442695, %v1085_v54 }
 0x13e   : > { %v2580_v15 = vpop.eup %2579  ;;  %v1132_v61 = vadd.f32 1.0, %v2578_v56  ;;  %v1029_v63 = vpop.f32.mrf.mxu1 }
 0x13f   : > { %2581 = vpow2.f32 %v1110_v11  ;;  %v3408_v59 = vadd.f32 %v3340_v29, %v1029_v63  ;;  %v1155_v62 = vmul.f32 0.6931472, %v2580_v15 }
 0x140   : > { %2583 = vlog2.f32 %v1132_v61 }
 0x141   : > { %v1070_v2 = vand.u32 2147483647, %v3408_v59  ;;  %v1179_v5 = vadd.f32 %v1155_v62, %v1051_v16 }
 0x143   : > { %v1086_v6 = vsub.f32 0.0, %v1070_v2  ;;  %v2240_v58 = vadd.f32 -0.6931472, %v1179_v5 }
 0x145   : > { %2303 = vmatmul.msk.bf16.gmra.mxu3 %vm1573_vm11, %v1561_v26  ;;  %v2582_v1 = vpop.eup %2581  ;;  %v1112_v9 = vmul.f32 1.442695, %v1086_v6  ;;  %v1207_v12 = vpack.c.bf16 %v2240_v58, %v2239_v7  ;;  %v1053_v26 = vmax.f32 %v1027_v51, 0.0  ;;  %v1054_v51 = vmax.f32 %v3408_v59, 0.0 }
 0x146   : > { %v1133_v10 = vadd.f32 1.0, %v2582_v1  ;;  %v1031_v8 = vpop.f32.mrf.mxu1  ;;  %v2584_v17 = vpop.eup %2583 }
 0x147   : > { %2585 = vpow2.f32 %v1112_v9  ;;  %v1032_v14 = vadd.f32 %v3340_v29, %v1031_v8  ;;  %1303 = vmatmul.bf16.gmra.mxu2 %v1207_v12  ;;  %v1157_v20 = vmul.f32 0.6931472, %v2584_v17 }
 0x148   : > { %2587 = vlog2.f32 %v1133_v10 }
 0x149   : > { %v1071_v18 = vand.u32 2147483647, %v1032_v14  ;;  %v1180_v60 = vadd.f32 %v1157_v20, %v1052_v27  ;;  %v3436_v20 = vpop.permute.xlu0 %1407 }
 0x14b   : > { %v1087_v19 = vsub.f32 0.0, %v1071_v18  ;;  %v2241_v39 = vadd.f32 -0.6931472, %v1180_v60  ;;  %v3434_v18 = vpop.permute.xlu1 %1417 }
 0x14d   : > { %v2586_v23 = vpop.eup %2585  ;;  %v1114_v13 = vmul.f32 1.442695, %v1087_v19 }
 0x14e   : > { %v2588_v25 = vpop.eup %2587  ;;  %v1134_v28 = vadd.f32 1.0, %v2586_v23  ;;  %v1034_v30 = vpop.f32.mrf.mxu1 }
 0x14f   : > { %2589 = vpow2.f32 %v1114_v13  ;;  %v3418_v31 = vadd.f32 %v3340_v29, %v1034_v30  ;;  %v1159_v33 = vmul.f32 0.6931472, %v2588_v25 }
 0x150   : > { %2591 = vlog2.f32 %v1134_v28 }
 0x151   : > { %v1072_v35 = vand.u32 2147483647, %v3418_v31  ;;  %v1181_v0 = vadd.f32 %v1159_v33, %v1053_v26  ;;  %v1056_v12 = vmax.f32 %v3418_v31, 0.0  ;;  %v3440_v33 = vpop.permute.xlu0 %1402 }
 0x153   : > { %v1088_v36 = vsub.f32 0.0, %v1072_v35  ;;  %v2242_v40 = vadd.f32 -0.6931472, %v1181_v0  ;;  %v3438_v28 = vpop.permute.xlu1 %1412 }
 0x155   : > { %2304 = vmatmul.msk.bf16.gmra.mxu3 %vm1573_vm11, %v1562_v24  ;;  %v2590_v37 = vpop.eup %2589  ;;  %v1116_v42 = vmul.f32 1.442695, %v1088_v36  ;;  %v1208_v38 = vpack.c.bf16 %v2242_v40, %v2241_v39  ;;  %v1055_v24 = vmax.f32 %v1032_v14, 0.0 }
 0x156   : > { %v1135_v44 = vadd.f32 1.0, %v2590_v37  ;;  %v1036_v45 = vpop.f32.mrf.mxu1  ;;  %v2592_v34 = vpop.eup %2591 }
 0x157   : > { %2593 = vpow2.f32 %v1116_v42  ;;  %v1037_v46 = vadd.f32 %v3340_v29, %v1036_v45  ;;  %1308 = vmatmul.bf16.gmra.mxu2 %v1208_v38  ;;  %v1161_v49 = vmul.f32 0.6931472, %v2592_v34 }
 0x158   : > { %2595 = vlog2.f32 %v1135_v44 }
 0x159   : > { %v1073_v47 = vand.u32 2147483647, %v1037_v46  ;;  %v1182_v56 = vadd.f32 %v1161_v49, %v1054_v51  ;;  %v1057_v10 = vmax.f32 %v1037_v46, 0.0  ;;  %v1378_v44 = vpop.permute.xlu0 %1377  ;;  %v3442_v46 = vpop.permute.xlu2 %1422 }
 0x15b   : > { %v1089_v48 = vsub.f32 0.0, %v1073_v47  ;;  %v2243_v16 = vadd.f32 -0.6931472, %v1182_v56  ;;  %v1388_v38 = vpop.permute.xlu1 %1387 }
 0x15d   : > { %v2594_v50 = vpop.eup %2593  ;;  %v1118_v21 = vmul.f32 1.442695, %v1089_v48 }
 0x15e   : > { %v2596_v22 = vpop.eup %2595  ;;  %v1136_v52 = vadd.f32 1.0, %v2594_v50  ;;  %v1039_v53 = vpop.f32.mrf.mxu1  ;;  %v3451_v50 = vld [vmem:[%s763_s28] ss:$0 sm:$0xff] }
 0x15f   : > { %2597 = vpow2.f32 %v1118_v21  ;;  %v1040_v54 = vadd.f32 %v3340_v29, %v1039_v53  ;;  %v1163_v55 = vmul.f32 0.6931472, %v2596_v22 }
 0x160   : > { %2599 = vlog2.f32 %v1136_v52 }
 0x161   : > { %v1074_v57 = vand.u32 2147483647, %v1040_v54  ;;  %v1183_v11 = vadd.f32 %v1163_v55, %v1055_v24  ;;  %v1058_v30 = vmax.f32 %v1040_v54, 0.0  ;;  %v1373_v47 = vpop.permute.xlu0 %1372  ;;  %v3444_v49 = vpop.permute.xlu2 %1397 }
 0x163   : > { %v1090_v15 = vsub.f32 0.0, %v1074_v57  ;;  %v2244_v61 = vadd.f32 -0.6931472, %v1183_v11  ;;  %v1383_v34 = vpop.permute.xlu1 %1382 }
 0x165   : > { %2305 = vmatmul.msk.bf16.gmra.mxu3 %vm1573_vm11, %v1563_v43  ;;  %v2598_v63 = vpop.eup %2597  ;;  %v1120_v59 = vmul.f32 1.442695, %v1090_v15  ;;  %v1209_v62 = vpack.c.bf16 %v2244_v61, %v2243_v16 }
 0x166   : > { %v1137_v4 = vadd.f32 1.0, %v2598_v63  ;;  %v1041_v2 = vpop.f32.mrf.mxu1  ;;  %v2600_v6 = vpop.eup %2599 }
 0x167   : > { %2601 = vpow2.f32 %v1120_v59  ;;  %v1042_v5 = vadd.f32 %v3340_v29, %v1041_v2  ;;  %1313 = vmatmul.bf16.gmra.mxu2 %v1209_v62  ;;  %v1165_v1 = vmul.f32 0.6931472, %v2600_v6 }
 0x168   : > { %2603 = vlog2.f32 %v1137_v4 }
 0x169   : > { %v1075_v7 = vand.u32 2147483647, %v1042_v5  ;;  %v1184_v14 = vadd.f32 %v1165_v1, %v1056_v12  ;;  %v1059_v60 = vmax.f32 %v1042_v5, 0.0  ;;  %v1348_v24 = vpop.permute.xlu0 %1347  ;;  %v3456_v55 = vpop.permute.xlu2 %1392 }
 0x16b   : > { %v1091_v58 = vsub.f32 0.0, %v1075_v7  ;;  %v2245_v29 = vadd.f32 -0.6931472, %v1184_v14  ;;  %v1358_v51 = vpop.permute.xlu1 %1357 }
 0x16d   : > { %v2602_v9 = vpop.eup %2601  ;;  %v1122_v32 = vmul.f32 1.442695, %v1091_v58 }
 0x16e   : > { %v2604_v41 = vpop.eup %2603  ;;  %v1138_v43 = vadd.f32 1.0, %v2602_v9 }
 0x16f   : > { %2605 = vpow2.f32 %v1122_v32  ;;  %v1167_v8 = vmul.f32 0.6931472, %v2604_v41 }
 0x170   : > { %2607 = vlog2.f32 %v1138_v43 }
 0x171   : > { %v1185_v17 = vadd.f32 %v1167_v8, %v1057_v10  ;;  %v1368_v59 = vpop.permute.xlu2 %1367 }
 0x173   : > { %v2246_v19 = vadd.f32 -0.6931472, %v1185_v17  ;;  %v1353_v11 = vpop.permute.xlu1 %1352 }
 0x175   : > { %v2606_v23 = vpop.eup %2605  ;;  %v1210_v27 = vpack.c.bf16 %v2246_v19, %v2245_v29 }
 0x176   : > { %v1139_v13 = vadd.f32 1.0, %v2606_v23  ;;  %v2608_v25 = vpop.eup %2607 }
 0x177   : > { %1318 = vmatmul.bf16.gmra.mxu2 %v1210_v27  ;;  %v1169_v26 = vmul.f32 0.6931472, %v2608_v25 }
 0x178   : > { %2609 = vlog2.f32 %v1139_v13  ;;  %v1611_v36 = vpop.f32.mrf.mxu3 }
 0x179   : > { %v1186_v0 = vadd.f32 %v1169_v26, %v1058_v30  ;;  %v1363_v1 = vpop.permute.xlu2 %1362 }
 0x17b   : > { %v2247_v40 = vadd.f32 -0.6931472, %v1186_v0 }
 0x17e   : > { %v2610_v31 = vpop.eup %2609 }
 0x17f   : > { %v1171_v35 = vmul.f32 0.6931472, %v2610_v31 }
 0x180   : > { %v1613_v45 = vpop.f32.mrf.mxu3 }
 0x181   : > { %v1187_v39 = vadd.f32 %v1171_v35, %v1059_v60 }
 0x183   : > { %v2248_v37 = vadd.f32 -0.6931472, %v1187_v39 }
 0x185   : > { %v1211_v42 = vpack.c.bf16 %v2248_v37, %v2247_v40 }
 0x187   : > { %1323 = vmatmul.bf16.gmra.mxu2 %v1211_v42 }
 0x188   : > { %v1616_v48 = vpop.f32.mrf.mxu3 }
 0x190   : > { %v1618_v53 = vpop.f32.mrf.mxu3 }
 0x198   : > { %v1621_v61 = vpop.f32.mrf.mxu3 }
 0x19a   : > { %v1289_v21 = vpop.f32.mrf.mxu2 }
 0x19b   : > { %v1290_v22 = vadd.f32 %v3451_v50, %v1289_v21 }
 0x19d   : > { %v1425_v52 = vmul.f32 %v1348_v24, %v1290_v22 }
 0x19f   : > { %v3454_v54 = vmul.f32 %v1611_v36, %v1425_v52 }
 0x1a0   : > { %v1623_v6 = vpop.f32.mrf.mxu3 }
 0x1a2   : > { %v1291_v56 = vpop.f32.mrf.mxu2 }
 0x1a3   : > { %v1292_v57 = vadd.f32 %v3451_v50, %v1291_v56 }
 0x1a5   : > { %v1426_v15 = vmul.f32 %v1353_v11, %v1292_v57 }
 0x1a7   : > { %v3459_v16 = vmul.f32 %v1613_v45, %v1426_v15 }
 0x1a8   : > { %v1626_v10 = vpop.f32.mrf.mxu3 }
 0x1a9   : > { %v1667_v63 = vpack.c.bf16 %v3459_v16, %v3454_v54  ;;  %v2416_v54 = vld [vmem:[%s3130_s29 + $0x8] sm:$0xff]  ;;  %v2415_v16 = vld [vmem:[%s3130_s29] sm:$0xff] }
 0x1aa   : > { %v1294_v62 = vpop.f32.mrf.mxu2 }
 0x1ab   : > { %v1295_v4 = vadd.f32 %v3451_v50, %v1294_v62 }
 0x1ad   : > { %v1427_v2 = vmul.f32 %v1358_v51, %v1295_v4 }
 0x1af   : > { %v3464_v5 = vmul.f32 %v1616_v48, %v1427_v2 }
 0x1b0   : > { %v1628_v23 = vpop.f32.mrf.mxu3 }
 0x1b2   : > { %v1296_v7 = vpop.f32.mrf.mxu2 }
 0x1b3   : > { %v1297_v58 = vadd.f32 %v3451_v50, %v1296_v7 }
 0x1b5   : > { %v1428_v9 = vmul.f32 %v1363_v1, %v1297_v58 }
 0x1b7   : > { %v3467_v12 = vmul.f32 %v1618_v53, %v1428_v9 }
 0x1b8   : > { %v1631_v60 = vpop.f32.mrf.mxu3 }
 0x1b9   : > { %v1668_v32 = vpack.c.bf16 %v3467_v12, %v3464_v5  ;;  %v2419_v5 = vld [vmem:[%s3130_s29 + $0x20] sm:$0xff]  ;;  %v2418_v12 = vld [vmem:[%s3130_s29 + $0x18] sm:$0xff] }
 0x1ba   : > { %v1299_v41 = vpop.f32.mrf.mxu2 }
 0x1bb   : > { %v1300_v43 = vadd.f32 %v3451_v50, %v1299_v41 }
 0x1bd   : > { %v1429_v8 = vmul.f32 %v1368_v59, %v1300_v43 }
 0x1bf   : > { %v3472_v14 = vmul.f32 %v1621_v61, %v1429_v8 }
 0x1c0   : > { %v1633_v37 = vpop.f32.mrf.mxu3 }
 0x1c2   : > { %v1301_v17 = vpop.f32.mrf.mxu2 }
 0x1c3   : > { %v1302_v29 = vadd.f32 %v3451_v50, %v1301_v17 }
 0x1c5   : > { %v1430_v19 = vmul.f32 %v1373_v47, %v1302_v29 }
 0x1c7   : > { %v1656_v27 = vmul.f32 %v1623_v6, %v1430_v19 }
 0x1c8   : > { %v1636_v21 = vpop.f32.mrf.mxu3 }
 0x1c9   : > { %v1669_v13 = vpack.c.bf16 %v1656_v27, %v3472_v14 }
 0x1ca   : > { %v1304_v25 = vpop.f32.mrf.mxu2 }
 0x1cb   : > { %v1305_v26 = vadd.f32 %v3451_v50, %v1304_v25  ;;  %v2898_v25 = vmov 1.0|1.0  }
 0x1cd   : > { %v1431_v30 = vmul.f32 %v1378_v44, %v1305_v26 }
 0x1cf   : > { %v1657_v31 = vmul.f32 %v1626_v10, %v1431_v30 }
 0x1d0   : > { %v1638_v24 = vpop.f32.mrf.mxu3 }
 0x1d2   : > { %v1306_v35 = vpop.f32.mrf.mxu2 }
 0x1d3   : > { %v1307_v0 = vadd.f32 %v3451_v50, %v1306_v35  ;;  %v2428_v35 = vld [vmem:[%s3132_s14 + $0x28] sm:$0xff] }
 0x1d5   : > { %v1432_v36 = vmul.f32 %v1383_v34, %v1307_v0  ;;  %v2427_v0 = vld [vmem:[%s3132_s14 + $0x20] sm:$0xff] }
 0x1d7   : > { %v1658_v39 = vmul.f32 %v1628_v23, %v1432_v36  ;;  %v2426_v36 = vld [vmem:[%s3132_s14 + $0x18] sm:$0xff] }
 0x1d8   : > { %v1641_v44 = vpop.f32.mrf.mxu3 }
 0x1d9   : > { %v1670_v40 = vpack.c.bf16 %v1658_v39, %v1657_v31  ;;  %v2430_v31 = vld [vmem:[%s3132_s14 + $0x38] sm:$0xff]  ;;  %v2425_v39 = vld [vmem:[%s3132_s14 + $0x10] sm:$0xff] }
 0x1da   : > { %v1309_v42 = vpop.f32.mrf.mxu2 }
 0x1db   : > { %v1310_v45 = vadd.f32 %v3451_v50, %v1309_v42  ;;  %v2545_v42 = vld [vmem:[%s766_s13] ss:$0 sm:$0xff] }
 0x1dd   : > { %v1433_v47 = vmul.f32 %v1388_v38, %v1310_v45 }
 0x1df   : > { %v1659_v48 = vmul.f32 %v1631_v60, %v1433_v47  ;;  %v2429_v60 = vld [vmem:[%s3132_s14 + $0x30] sm:$0xff] }
 0x1e0   : > { %v1643_v56 = vpop.f32.mrf.mxu3 }
 0x1e2   : > { %v1311_v51 = vpop.f32.mrf.mxu2 }
 0x1e3   : > { %v1312_v10 = vadd.f32 %v3451_v50, %v1311_v51 }
 0x1e8   : > { %v1646_v15 = vpop.f32.mrf.mxu3 }
 0x1ea   : > { %v1314_v22 = vpop.f32.mrf.mxu2 }
 0x1eb   : > { %v1315_v1 = vadd.f32 %v3451_v50, %v1314_v22 }
 0x1ed   : > { %v1435_v17 = vmul.f32 %v3444_v49, %v1315_v1  ;;  %v2544_v49 = vld [vmem:[#allocation10] ss:$0 sm:$0xff] }
 0x1ef   : > { %v1661_v23 = vmul.f32 %v1636_v21, %v1435_v17 }
 0x1f0   : > { %v1648_v58 = vpop.f32.mrf.mxu3 }
 0x1f2   : > { %v1316_v52 = vpop.f32.mrf.mxu2 }
 0x1f3   : > { %v1317_v2 = vadd.f32 %v3451_v50, %v1316_v52 }
 0x1f5   : > { %v1436_v8 = vmul.f32 %v3440_v33, %v1317_v2  ;;  %v1565_v33 = vshrl.u32 %v1458_v3, 7  ;;  %v2420_v3 = vld [vmem:[%s3130_s29 + $0x28] sm:$0xff] }
 0x1f7   : > { %v1662_v19 = vmul.f32 %v1638_v24, %v1436_v8  ;;  %vm1567_vm2 = vcmp.eq.s32.totalorder %v1565_v33, %v2544_v49 }
 0x1f8   : > { %vm2306_vm3 = vmpackc.low %vm1567_vm2, %vm1567_vm2 }
 0x1fa   : > { %v1319_v53 = vpop.f32.mrf.mxu2 }
 0x1fb   : > { %v1320_v62 = vadd.f32 %v3451_v50, %v1319_v53 }
 0x1fd   : > { %v1437_v9 = vmul.f32 %v3436_v20, %v1320_v62  ;;  %v1672_v20 = vpack.c.bf16 %v1662_v19, %v1661_v23 }
 0x1ff   : > { %v1663_v29 = vmul.f32 %v1641_v44, %v1437_v9 }
 0x202   : > { %v1321_v57 = vpop.f32.mrf.mxu2 }
 0x203   : > { %v1322_v61 = vadd.f32 %v3451_v50, %v1321_v57 }
 0x205   : > { %v1438_v6 = vmul.f32 %v3438_v28, %v1322_v61  ;;  %v1434_v28 = vmul.f32 %v3456_v55, %v1312_v10  ;;  %v2422_v55 = vld [vmem:[%s3130_s29 + $0x38] sm:$0xff] }
 0x207   : > { %v1664_v14 = vmul.f32 %v1643_v56, %v1438_v6  ;;  %v1660_v27 = vmul.f32 %v1633_v37, %v1434_v28  ;;  %v2423_v37 = vld [vmem:[%s3132_s14] sm:$0xff] }
 0x20a   : > { %v1324_v11 = vpop.f32.mrf.mxu2 }
 0x20b   : > { %v1325_v34 = vadd.f32 %v3451_v50, %v1324_v11 }
 0x20d   : > { %v1439_v38 = vmul.f32 %v3434_v18, %v1325_v34  ;;  %v2546_v34 = vld [vmem:[%s769_s4] ss:$0 sm:$0xff] }
 0x20f   : > { %v1665_v41 = vmul.f32 %v1646_v15, %v1439_v38 }
 0x212   : > { %v1326_v59 = vpop.f32.mrf.mxu2 }
 0x213   : > { %v1327_v4 = vadd.f32 %v3451_v50, %v1326_v59  ;;  %v1671_v50 = vpack.c.bf16 %v1660_v27, %v1659_v48  ;;  %v1869_v59 = vld [vmem:[#allocation2] sm:$0xff] }
 0x215   : > { %v1440_v7 = vmul.f32 %v3442_v46, %v1327_v4  ;;  %v1673_v46 = vpack.c.bf16 %v1664_v14, %v1663_v29 }
 0x217   : > { %v1666_v43 = vmul.f32 %v1648_v58, %v1440_v7 }
 0x219   : > { %v1674_v18 = vpack.c.bf16 %v1666_v43, %v1665_v41 }
 0x21b   : > { %1676 = vmatpush.bf16.msrb.mxu0 %v1674_v18 }
 0x21f   : > { %1677 = vmatpush.bf16.msrb.mxu0 %v1673_v46 }
 0x223   : > { %1678 = vmatpush.bf16.msrb.mxu0 %v1672_v20 }
 0x227   : > { %1679 = vmatpush.bf16.msrb.mxu0 %v1671_v50 }
 0x22b   : > { %1680 = vmatpush.bf16.msrb.mxu0 %v1670_v40  ;;  %v2424_v40 = vld [vmem:[%s3132_s14 + $0x8] sm:$0xff] }
 0x22f   : > { %1681 = vmatpush.bf16.msrb.mxu0 %v1669_v13  ;;  %v2421_v13 = vld [vmem:[%s3130_s29 + $0x30] sm:$0xff] }
 0x233   : > { %1682 = vmatpush.bf16.msrb.mxu0 %v1668_v32  ;;  %v2417_v32 = vld [vmem:[%s3130_s29 + $0x10] sm:$0xff] }
 0x237   : > { %1683 = vmatpush.bf16.msrb.mxu0 %v1667_v63 }
 0x23a   : > { %2307 = vmatmul.msk.bf16.vlgmr.msrb.gmra.mxu0 %vm2306_vm3, %v2898_v25 }
 0x23b   : > { %1764 = vmatpush.bf16.msra.mxu0 %v2422_v55 }
 0x23f   : > { %1765 = vmatpush.bf16.msra.mxu0 %v2421_v13 }
 0x243   : > { %1766 = vmatpush.bf16.msra.mxu0 %v2420_v3 }
 0x247   : > { %1767 = vmatpush.bf16.msra.mxu0 %v2419_v5 }
 0x24b   : > { %1768 = vmatpush.bf16.msra.mxu0 %v2418_v12 }
 0x24f   : > { %1769 = vmatpush.bf16.msra.mxu0 %v2417_v32 }
 0x253   : > { %1770 = vmatpush.bf16.msra.mxu0 %v2416_v54 }
 0x257   : > { %1771 = vmatpush.bf16.msra.mxu0 %v2415_v16 }
 0x25b   : > { %1856 = vmatpush.bf16.msrb.mxu0 %v2430_v31 }
 0x25f   : > { %1857 = vmatpush.bf16.msrb.mxu0 %v2429_v60 }
 0x263   : > { %1858 = vmatpush.bf16.msrb.mxu0 %v2428_v35 }
 0x267   : > { %1859 = vmatpush.bf16.msrb.mxu0 %v2427_v0 }
 0x26b   : > { %1860 = vmatpush.bf16.msrb.mxu0 %v2426_v36 }
 0x26f   : > { %1861 = vmatpush.bf16.msrb.mxu0 %v2425_v39 }
 0x273   : > { %1862 = vmatpush.bf16.msrb.mxu0 %v2424_v40 }
 0x277   : > { %1863 = vmatpush.bf16.msrb.mxu0 %v2423_v37 }
 0x2b7   : > { %v1685_v63 = vpop.f32.mrf.mxu0 }
 0x2b8   : > { %v1695_v26 = vpack.c.bf16 %v1685_v63, %v1685_v63 }
 0x2ba   : > { %1772 = vmatmul.bf16.vlgmr.msra.gmra.mxu0 %v1695_v26 }
 0x2bf   : > { %v1687_v30 = vpop.f32.mrf.mxu0 }
 0x337   : > { %v1773_v45 = vpop.f32.mrf.mxu0 }
 0x338   : > { %v1774_v47 = vadd.f32 %v2545_v42, %v1773_v45 }
 0x33a   : > { %v1778_v48 = vand.u32 2147483647, %v1774_v47  ;;  %v1777_v53 = vmax.f32 %v1774_v47, 0.0 }
 0x33c   : > { %v1779_v51 = vsub.f32 0.0, %v1778_v48 }
 0x33e   : > { %v1780_v21 = vmul.f32 1.442695, %v1779_v51 }
 0x33f   : > { %v1775_v22 = vpop.f32.mrf.mxu0 }
 0x340   : > { %2611 = vpow2.f32 %v1780_v21 }
 0x346   : > { %v2612_v24 = vpop.eup %2611 }
 0x347   : > { %v1782_v52 = vadd.f32 1.0, %v2612_v24 }
 0x349   : > { %2613 = vlog2.f32 %v1782_v52 }
 0x34f   : > { %v2614_v44 = vpop.eup %2613 }
 0x350   : > { %v1784_v56 = vmul.f32 0.6931472, %v2614_v44 }
 0x352   : > { %v1785_v57 = vadd.f32 %v1784_v56, %v1777_v53 }
 0x354   : > { %v2340_v11 = vadd.f32 -0.6931472, %v1785_v57 }
 0x356   : > { %v1787_v15 = vpack.c.bf16 %v2340_v11, %v2340_v11 }
 0x358   : > { %1864 = vmatmul.bf16.vlgmr.msrb.gmra.mxu0 %v1787_v15 }
 0x3d5   : > { %v1865_v61 = vpop.f32.mrf.mxu0 }
 0x3d6   : > { %v1866_v62 = vadd.f32 %v2546_v34, %v1865_v61 }
 0x3d8   : > { %v1870_v38 = vadd.f32 %v1869_v59, %v1866_v62 }
 0x3da   : > { %1871 = vst [vmem:[#allocation2] sm:$0xff] %v1870_v38 }
 0x3db   : > { %1872 = vst [vmem:[#allocation16] sm:$0xff] %v1870_v38 }
 0x3dc   : > { %2450 = dma.vmem_to_hbm [thread:$0]  (%p2480_p3), %s1880_s0, 128, %s1882_s8, [#allocation7]  }
 0x3dd   : > { %v1867_v4 = vpop.f32.mrf.mxu0 }
 0x3de   : > { %2864 = dma.done.wait (%p2480_p3), [#allocation7], 128  }
 0x3df   : > { %2866 = vsyncadd (%p2480_p3), [#allocation7], 4294967168 }
 0x3e0 PF: > { %s3609_s4 = sld [smem:[#allocation23_spill]]  ;;  %s3613_s29 = smov %s2873_s30 }
 0x3e1   : > { %s3610_s16 = sld [smem:[#allocation25_spill]]  ;;  %s3614_s30 = smov %s2877_s15 }
 0x3e2   : > { %s3611_s9 = sld [smem:[#allocation22_spill]] }
 0x3e3   : > { %s3612_s17 = sld [smem:[#allocation24_spill]] }
 0x3e6   : > { %s33_s18 = sadd.s32 1, %s3609_s4  }
 0x3e7   : > { %p30_p4 = scmp.ge.s32.totalorder %s33_s18, 4   ;;  %s3615_s15 = smov %s3610_s16 }
 0x3e8   : > { %s3616_s16 = smov %s3611_s9 }
 0x3e9   :  { %32 = sbr.rel (!%p30_p4) target bundleno = 20 (0x14), region = 188 }
 0x3ee   :  { %1895 = vsyncpa [#allocation6], 1 }
 0x3ef   :  { %1897 = vsyncpa [#allocation6 + $0x1], 1 }
 0x3f0   :  { %1898 = vsyncpa [#allocation9], 1 }
 0x3f1   :  { %1899 = vsyncpa [#allocation12], 1 }
 0x3f2   :  { %1901 = vsyncpa [#allocation12 + $0x1], 1 }
 0x3f3   :  { %1902 = vsyncpa [#allocation15], 1 }
 0x3f4   :  { %1904 = vsyncpa [#allocation15 + $0x1], 1 }
 0x3f5   :  { %1905 = vsyncpa [#allocation7], 1 }
 0x3f6   :  { %1907 = vsyncpa [#allocation7 + $0x1], 1 }

</bundles_post_ra>
